<compile_context>
chip_gen: v6e
topology: v6e:2x2x1
jax: 0.10.0
libtpu: 0.0.40
codegen_flags: <defaults>
</compile_context>

<pallas_src>
import functools

import jax
import jax.numpy as jnp
from jax.experimental import pallas as pl
from jax.experimental.pallas import tpu as pltpu

BN_EPS = 1e-5
LANE = 128


def _round_up(x, m):
    return (x + m - 1) // m * m


def _vmem_caps():
    """Returns (vmem_limit_bytes for the kernel, working-set sizing budget)."""
    try:
        cap = int(pltpu.get_tpu_info().vmem_capacity_bytes)
    except Exception:
        cap = 64 * 1024 * 1024          # assume the v7x worst case (64 MiB physical)
    limit = min(cap * 3 // 4, 100 * 1024 * 1024)   # 48 MiB on v7x, 96 MiB on v5e/v6e
    budget = limit * 4 // 5                         # headroom for pipeline internals
    return limit, budget


# ---------------------------------------------------------------------------
# Fused (patches @ W) -> BatchNorm(training batch stats) -> ReLU kernel.
# grid = (Cout tiles j, 2 phases, M tiles m).
#   phase 0: matmul (f32 acc), accumulate per-channel sum / sumsq, stash raw y
#            in VMEM; finalize mean / rstd at the last M tile.
#   phase 1: pure elementwise normalize + ReLU from the stashed y (no dot, no
#            patch / weight reads); falls back to a recompute when store_y=False.
# ---------------------------------------------------------------------------
def _matmul_bn_relu_kernel(p_ref, w_ref, gamma_ref, beta_ref, o_ref,
                           sum_ref, sq_ref, mu_ref, rstd_ref, *y_scratch,
                           m_total, store_y):
    phase = pl.program_id(1)
    m = pl.program_id(2)
    nm = pl.num_programs(2)
    y_ref = y_scratch[0] if store_y else None

    @pl.when(jnp.logical_and(phase == 0, m == 0))
    def _init():
        sum_ref[...] = jnp.zeros_like(sum_ref)
        sq_ref[...] = jnp.zeros_like(sq_ref)

    @pl.when(phase == 0)
    def _stats_pass():
        # bf16 (or f32) operands, f32 accumulation on the MXU.
        y = jnp.dot(p_ref[...], w_ref[...], preferred_element_type=jnp.float32)
        # Zero-padded rows of the last M tile contribute 0 to both sums.
        sum_ref[...] += jnp.sum(y, axis=0, keepdims=True)
        sq_ref[...] += jnp.sum(y * y, axis=0, keepdims=True)
        if store_y:
            y_ref[m] = y                      # stash the unnormalized tile in VMEM

        @pl.when(m == nm - 1)
        def _finalize_stats():
            inv_m = 1.0 / m_total
            mu = sum_ref[...] * inv_m
            # TODO(synk): E[y^2]-E[y]^2 can cancel for large-mean activations; a third
            # pass over the stashed y would give the safer two-pass variance.
            var = jnp.maximum(sq_ref[...] * inv_m - mu * mu, 0.0)
            mu_ref[...] = mu
            rstd_ref[...] = jax.lax.rsqrt(var + BN_EPS)

    @pl.when(phase == 1)
    def _normalize_pass():
        if store_y:
            y = y_ref[m]                      # no dot, no patch read in phase 1
        else:                                 # VMEM-spill fallback: recompute the tile
            y = jnp.dot(p_ref[...], w_ref[...], preferred_element_type=jnp.float32)
        scale = rstd_ref[...] * gamma_ref[...]
        out = (y - mu_ref[...]) * scale + beta_ref[...]
        # Padded rows of the last M tile hold beta-shifted garbage here; the wrapper's
        # [:M] slice discards them.
        o_ref[...] = jnp.maximum(out, 0.0).astype(o_ref.dtype)


# ---------------------------------------------------------------------------
# Plain-JAX glue (im2col, zero-dilation, bilinear resize). Cheap data-movement
# ops kept outside the kernel.
# ---------------------------------------------------------------------------
def _im2col_nhwc(x, k, stride, padding):
    """(N,H,W,C) -> ((N*Ho*Wo, K*K*C), Ho, Wo); column order (kh, kw, c)."""
    N, H, W, C = x.shape
    Ho = (H + 2 * padding - k) // stride + 1
    Wo = (W + 2 * padding - k) // stride + 1
    xp = jnp.pad(x, ((0, 0), (padding, padding), (padding, padding), (0, 0)))
    taps = []
    for kh in range(k):
        for kw in range(k):
            taps.append(xp[:, kh:kh + stride * Ho:stride, kw:kw + stride * Wo:stride, :])
    patches = jnp.concatenate(taps, axis=-1)            # (N, Ho, Wo, K*K*C)
    return patches.reshape(N * Ho * Wo, k * k * C), Ho, Wo


def _zero_dilate_nhwc(x, stride):
    """Insert (stride-1) zeros between spatial samples (fractional striding)."""
    if stride == 1:
        return x
    N, H, W, C = x.shape
    out = jnp.zeros((N, (H - 1) * stride + 1, (W - 1) * stride + 1, C), x.dtype)
    return out.at[:, ::stride, ::stride, :].set(x)


def _bilinear_matrix(in_size, out_size):
    """Interp matrix matching F.interpolate(mode='bilinear', align_corners=False)."""
    i = jnp.arange(out_size, dtype=jnp.float32)
    src = jnp.clip((i + 0.5) * (in_size / out_size) - 0.5, 0.0, in_size - 1)
    lo = jnp.floor(src).astype(jnp.int32)
    hi = jnp.minimum(lo + 1, in_size - 1)
    w_hi = src - lo.astype(jnp.float32)
    rows = jnp.arange(out_size)
    a = jnp.zeros((out_size, in_size), jnp.float32)
    a = a.at[rows, lo].add(1.0 - w_hi)
    a = a.at[rows, hi].add(w_hi)
    return a


def _bilinear_resize_nhwc(x, out_size):
    _, H, W, _ = x.shape
    ah = _bilinear_matrix(H, out_size)
    aw = _bilinear_matrix(W, out_size)
    x = jnp.einsum("ph,nhwc->npwc", ah, x)
    return jnp.einsum("qw,npwc->npqc", aw, x)


def _convtranspose_as_conv_weight(w_t):
    """PyTorch ConvTranspose2d weight (Cin, Cout, K, K) -> equivalent OIHW conv weight."""
    return jnp.transpose(w_t[:, :, ::-1, ::-1], (1, 0, 2, 3))


# ---------------------------------------------------------------------------
# Tile sizing from the per-generation VMEM budget.
# ---------------------------------------------------------------------------
def _choose_tiles(M, kc_p, tn, budget, tm_override, force_recompute, itemsize):
    m_align = 256 if M >= 256 else 16            # 256-aligned M tiles feed the 256-wide MXU
    per_row = 2 * kc_p * itemsize + 2 * tn * itemsize   # dbl-buffered patch + output rows
    fixed = 2 * kc_p * tn * itemsize + 16 * tn * 4      # dbl-buffered weight tile + params/stats
    if tm_override is not None:
        tm = max(16, _round_up(min(tm_override, _round_up(M, 16)), 16))
    else:
        y_est = _round_up(M, m_align) * tn * 4   # resident f32 y strip estimate
        avail = budget - fixed - y_est
        if avail < 256 * per_row:                # y strip would not fit -> size for recompute
            avail = budget - fixed
        tm_cap = max(256, avail // per_row // m_align * m_align)
        tm = max(16, min(_round_up(M, m_align), tm_cap))
    m_p = _round_up(M, tm)
    store_y = (not force_recompute) and (fixed + m_p * tn * 4 + tm * per_row) <= budget
    return tm, m_p, store_y


# ---------------------------------------------------------------------------
# Fused Conv(im2col) + BN(train) + ReLU wrapper around the Pallas kernel.
# ---------------------------------------------------------------------------
def _fused_conv_bn_relu_nhwc(x, weight, gamma, beta, *, stride, padding,
                             tm=None, compute_dtype=jnp.bfloat16,
                             force_recompute=False):
    """x: (N,H,W,Cin) NHWC.  weight: (Cout,Cin,K,K) OIHW.  Training-mode BN, no bias."""
    N, H, W, Cin = x.shape
    Cout, _, K, _ = weight.shape

    # TODO(synk): im2col stays in plain JAX (a K*K-inflated HBM copy); an implicit-GEMM
    # kernel (halo DMA via memory_space=pl.ANY + 9 shifted dots) would remove it.
    patches, Ho, Wo = _im2col_nhwc(x, K, stride, padding)       # (M, Kc)
    M, Kc = patches.shape

    kc_p = _round_up(Kc, LANE)
    cout_p = _round_up(Cout, LANE)
    # tn: keep >=2 Cout tiles once cout_p >= 256 so v7x's second TensorCore has work on
    # the "parallel" axis; 256-wide tiles once there are plenty of Cout tiles.
    tn = 256 if cout_p >= 512 else LANE

    limit, budget = _vmem_caps()
    itemsize = jnp.dtype(compute_dtype).itemsize
    tm, m_p, store_y = _choose_tiles(M, kc_p, tn, budget, tm, force_recompute, itemsize)
    nm = m_p // tm
    nj = cout_p // tn

    patches_p = jnp.pad(patches.astype(compute_dtype), ((0, m_p - M), (0, kc_p - Kc)))
    w2d = jnp.transpose(weight, (2, 3, 1, 0)).reshape(Kc, Cout)     # (kh,kw,ci)-major
    w_p = jnp.pad(w2d.astype(compute_dtype), ((0, kc_p - Kc), (0, cout_p - Cout)))
    g_p = jnp.pad(gamma.astype(jnp.float32), (0, cout_p - Cout)).reshape(1, cout_p)
    b_p = jnp.pad(beta.astype(jnp.float32), (0, cout_p - Cout)).reshape(1, cout_p)

    if store_y:
        # Phase 1 never touches the patches: park their block index on the last phase-0
        # block so the index does not change and no DMA is issued while normalizing.
        patch_map = lambda j, p, m: ((1 - p) * m + p * (nm - 1), 0)
    else:
        patch_map = lambda j, p, m: (m, 0)

    scratch = [
        pltpu.VMEM((1, tn), jnp.float32),   # per-channel sum
        pltpu.VMEM((1, tn), jnp.float32),   # per-channel sum of squares
        pltpu.VMEM((1, tn), jnp.float32),   # mean
        pltpu.VMEM((1, tn), jnp.float32),   # 1/sqrt(var + eps)
    ]
    if store_y:
        scratch.append(pltpu.VMEM((nm, tm, tn), jnp.float32))   # unnormalized y strip

    out_p = pl.pallas_call(
        functools.partial(_matmul_bn_relu_kernel, m_total=M, store_y=store_y),
        out_shape=jax.ShapeDtypeStruct((m_p, cout_p), compute_dtype),
        grid=(nj, 2, nm),
        in_specs=[
            pl.BlockSpec((tm, kc_p), patch_map),                # patches tile
            pl.BlockSpec((kc_p, tn), lambda j, p, m: (0, j)),   # weights (resident per j)
            pl.BlockSpec((1, tn), lambda j, p, m: (0, j)),      # gamma
            pl.BlockSpec((1, tn), lambda j, p, m: (0, j)),      # beta
        ],
        # Parked at block (0, j) during phase 0 (output resident across the phase/M axes,
        # standard accumulator idiom): the block index only changes after phase 1's m=0
        # store has fully overwritten the buffer, so no uninitialized write-backs occur.
        out_specs=pl.BlockSpec((tm, tn), lambda j, p, m: (m * p, j)),
        scratch_shapes=scratch,
        compiler_params=pltpu.CompilerParams(
            dimension_semantics=("parallel", "arbitrary", "arbitrary"),
            vmem_limit_bytes=limit,
        ),
    )(patches_p, w_p, g_p, b_p)

    # TODO(synk): at UNet-scale channel counts (Cout % 128 == 0) the channel slice is a
    # no-op and the padded layout could be carried straight into the next stage.
    return out_p[:M, :Cout].reshape(N, Ho, Wo, Cout)


# ---------------------------------------------------------------------------
# UpBlock forward.
# ---------------------------------------------------------------------------
def up_block(x_nchw, skip_nchw, params, out_size, *, tm=None,
             compute_dtype=jnp.bfloat16, force_recompute=False):
    """UpBlock(out_size, in_ch, skip_ch, out_ch) forward, training-mode BN.

    NCHW in / NCHW out at the PyTorch module boundary; everything inside runs
    channels-last (NHWC). Conv / ConvTranspose biases are omitted because a
    per-channel additive bias is exactly cancelled by training-mode BatchNorm's
    mean subtraction, so outputs match the PyTorch module for any bias value.
    """
    x = jnp.transpose(x_nchw, (0, 2, 3, 1))
    skip = jnp.transpose(skip_nchw, (0, 2, 3, 1))
    k = params["up_wt"].shape[-1]

    # up_conv: ConvTranspose2d(k=3,s=2,p=1) == conv(zero-dilated x, flipped W^T,
    # stride=1, padding=k-1-p) -> BN -> ReLU, then bilinear resize to out_size.
    # TODO(synk): the stride-phase (sub-pixel) decomposition would avoid the ~4x
    # wasted MXU work / patch DMA on the zero-dilated input.
    w_equiv = _convtranspose_as_conv_weight(params["up_wt"])
    xd = _zero_dilate_nhwc(x, 2)
    u = _fused_conv_bn_relu_nhwc(xd, w_equiv, params["up_g"], params["up_b"],
                                 stride=1, padding=k - 1 - 1, tm=tm,
                                 compute_dtype=compute_dtype,
                                 force_recompute=force_recompute)
    # TODO(synk): bilinear resize and channel concat are full-resolution HBM round-trips
    # of plain-JAX glue; folding them into the c1 stage's input read would remove them.
    u = _bilinear_resize_nhwc(u, out_size)

    cat = jnp.concatenate([u, skip.astype(u.dtype)], axis=-1)

    h = _fused_conv_bn_relu_nhwc(cat, params["c1_w"], params["c1_g"], params["c1_b"],
                                 stride=1, padding=1, tm=tm, compute_dtype=compute_dtype,
                                 force_recompute=force_recompute)
    h = _fused_conv_bn_relu_nhwc(h, params["c2_w"], params["c2_g"], params["c2_b"],
                                 stride=1, padding=1, tm=tm, compute_dtype=compute_dtype,
                                 force_recompute=force_recompute)
    return jnp.transpose(h, (0, 3, 1, 2))


# ---------------------------------------------------------------------------
# Pure-JAX reference (mirrors the PyTorch module, training-mode BN, no bias;
# stage outputs stored in compute_dtype to mirror the kernel's storage policy).
# ---------------------------------------------------------------------------
def _conv_bn_relu_ref(x, weight, gamma, beta, *, stride, padding,
                      lhs_dilation=(1, 1), compute_dtype=jnp.bfloat16):
    y = jax.lax.conv_general_dilated(
        x.astype(compute_dtype), weight.astype(compute_dtype),
        window_strides=(stride, stride),
        padding=[(padding, padding), (padding, padding)],
        lhs_dilation=lhs_dilation,
        dimension_numbers=("NHWC", "OIHW", "NHWC"),
        preferred_element_type=jnp.float32)
    mean = jnp.mean(y, axis=(0, 1, 2), keepdims=True)
    var = jnp.mean((y - mean) ** 2, axis=(0, 1, 2), keepdims=True)
    out = (y - mean) * jax.lax.rsqrt(var + BN_EPS) * gamma + beta
    return jnp.maximum(out, 0.0).astype(compute_dtype)


def _up_block_ref(x_nchw, skip_nchw, params, out_size, compute_dtype):
    x = jnp.transpose(x_nchw, (0, 2, 3, 1))
    skip = jnp.transpose(skip_nchw, (0, 2, 3, 1))
    k = params["up_wt"].shape[-1]
    w_equiv = _convtranspose_as_conv_weight(params["up_wt"])
    u = _conv_bn_relu_ref(x, w_equiv, params["up_g"], params["up_b"],
                          stride=1, padding=k - 1 - 1, lhs_dilation=(2, 2),
                          compute_dtype=compute_dtype)
    u = _bilinear_resize_nhwc(u, out_size)
    cat = jnp.concatenate([u, skip.astype(u.dtype)], axis=-1)
    h = _conv_bn_relu_ref(cat, params["c1_w"], params["c1_g"], params["c1_b"],
                          stride=1, padding=1, compute_dtype=compute_dtype)
    h = _conv_bn_relu_ref(h, params["c2_w"], params["c2_g"], params["c2_b"],
                          stride=1, padding=1, compute_dtype=compute_dtype)
    return jnp.transpose(h, (0, 3, 1, 2))


if __name__ == "__main__":
    key = jax.random.PRNGKey(0)
    ks = jax.random.split(key, 9)

    # UpBlock(out_size=16, in_ch=4, skip_ch=4, out_ch=8); x is the coarse feature map.
    N, in_ch, skip_ch, out_ch = 2, 4, 4, 8
    h_in = w_in = 8
    out_size = 16

    x = jax.random.normal(ks[0], (N, in_ch, h_in, w_in), jnp.float32)
    skip = jax.random.normal(ks[1], (N, skip_ch, out_size, out_size), jnp.float32)

    def _uniform(k, shape, fan_in):
        bound = 1.0 / (fan_in ** 0.5)
        return jax.random.uniform(k, shape, jnp.float32, -bound, bound)

    params = {
        # ConvTranspose2d(in_ch, in_ch, 3, 2, 1) weight layout: (Cin, Cout, K, K)
        "up_wt": _uniform(ks[2], (in_ch, in_ch, 3, 3), in_ch * 9),
        "up_g": jax.random.uniform(ks[3], (in_ch,), jnp.float32, 0.5, 1.5),
        "up_b": 0.1 * jax.random.normal(ks[4], (in_ch,), jnp.float32),
        # Conv2d(in_ch + skip_ch, out_ch, 3, 1, 1)
        "c1_w": _uniform(ks[5], (out_ch, in_ch + skip_ch, 3, 3), (in_ch + skip_ch) * 9),
        "c1_g": jax.random.uniform(ks[6], (out_ch,), jnp.float32, 0.5, 1.5),
        "c1_b": 0.1 * jax.random.normal(ks[7], (out_ch,), jnp.float32),
        # Conv2d(out_ch, out_ch, 3, 1, 1); BatchNorm default init gamma=1, beta=0
        "c2_w": _uniform(ks[8], (out_ch, out_ch, 3, 3), out_ch * 9),
        "c2_g": jnp.ones((out_ch,), jnp.float32),
        "c2_b": jnp.zeros((out_ch,), jnp.float32),
    }

    ref_bf16 = _up_block_ref(x, skip, params, out_size, jnp.bfloat16)
    ref_f32 = _up_block_ref(x, skip, params, out_size, jnp.float32)

    # 1) Auto-tiled bf16 path (single-M-tile, resident-y, no recompute).
    out = jax.block_until_ready(up_block(x, skip, params, out_size))
    assert out.shape == (N, out_ch, out_size, out_size), out.shape
    assert jnp.allclose(out, ref_bf16, atol=5e-2, rtol=5e-2), (
        float(jnp.max(jnp.abs(out.astype(jnp.float32) - ref_bf16.astype(jnp.float32)))))

    # 2) tm=128 forces several M tiles so the multi-tile two-phase BN path + the
    #    parked-patch / resident-y logic is exercised across tiles.
    out = jax.block_until_ready(up_block(x, skip, params, out_size, tm=128))
    assert jnp.allclose(out, ref_bf16, atol=5e-2, rtol=5e-2), (
        float(jnp.max(jnp.abs(out.astype(jnp.float32) - ref_bf16.astype(jnp.float32)))))

    # 3) Recompute fallback path (y strip not stored in VMEM).
    out = jax.block_until_ready(
        up_block(x, skip, params, out_size, tm=128, force_recompute=True))
    assert jnp.allclose(out, ref_bf16, atol=5e-2, rtol=5e-2), (
        float(jnp.max(jnp.abs(out.astype(jnp.float32) - ref_bf16.astype(jnp.float32)))))

    # 4) f32-operand path as a second structural check (same kernel, f32 tiles).
    out = jax.block_until_ready(
        up_block(x, skip, params, out_size, compute_dtype=jnp.float32))
    assert jnp.allclose(out, ref_f32, atol=5e-2, rtol=5e-2), (
        float(jnp.max(jnp.abs(out - ref_f32))))

    print("KERNEL_OK")
</pallas_src>

<mosaic_0001>
module attributes {stable_mosaic.version = 11 : i64} {
  func.func @_matmul_bn_relu_kernel(%arg0: i32, %arg1: i32, %arg2: i32, %arg3: memref<512x128xbf16, #tpu.memory_space<vmem>>, %arg4: memref<128x128xbf16, #tpu.memory_space<vmem>>, %arg5: memref<1x128xf32, #tpu.memory_space<vmem>>, %arg6: memref<1x128xf32, #tpu.memory_space<vmem>>, %arg7: memref<512x128xbf16, #tpu.memory_space<vmem>>, %arg8: memref<1x128xf32, #tpu.memory_space<vmem>>, %arg9: memref<1x128xf32, #tpu.memory_space<vmem>>, %arg10: memref<1x128xf32, #tpu.memory_space<vmem>>, %arg11: memref<1x128xf32, #tpu.memory_space<vmem>>, %arg12: memref<1x512x128xf32, #tpu.memory_space<vmem>>) attributes {dimension_semantics = [#tpu.dimension_semantics<parallel>, #tpu.dimension_semantics<arbitrary>, #tpu.dimension_semantics<arbitrary>], iteration_bounds = array<i64: 1, 2, 1>, scalar_prefetch = 0 : i64, scratch_operands = 5 : i64, tpu.core_type = #tpu.core_type<tc>, window_params = [{transform_indices = @transform_0, window_bounds = array<i64: 512, 128>}, {transform_indices = @transform_1, window_bounds = array<i64: 128, 128>}, {transform_indices = @transform_2, window_bounds = array<i64: 1, 128>}, {transform_indices = @transform_3, window_bounds = array<i64: 1, 128>}, {transform_indices = @transform_4, window_bounds = array<i64: 512, 128>}]} {
    %c0_i32 = arith.constant 0 : i32
    %0 = arith.cmpi eq, %arg1, %c0_i32 : i32
    %c0_i32_0 = arith.constant 0 : i32
    %1 = arith.cmpi eq, %arg2, %c0_i32_0 : i32
    %2 = arith.andi %0, %1 : i1
    %3 = arith.extui %2 : i1 to i32
    %c0_i32_1 = arith.constant 0 : i32
    %4 = arith.cmpi ne, %3, %c0_i32_1 : i32
    scf.if %4 {
      %cst = arith.constant 0.000000e+00 : f32
      %11 = vector.broadcast %cst : f32 to vector<1x128xf32>
      %c0 = arith.constant 0 : index
      %c0_5 = arith.constant 0 : index
      %12 = vector.load %arg8[%c0, %c0_5] : memref<1x128xf32, #tpu.memory_space<vmem>>, vector<1x128xf32>
      tpu.vector_store %arg8[%c0, %c0_5], %11 {strides = array<i32>} : memref<1x128xf32, #tpu.memory_space<vmem>>, vector<1x128xf32>,
      %cst_6 = arith.constant 0.000000e+00 : f32
      %13 = vector.broadcast %cst_6 : f32 to vector<1x128xf32>
      %c0_7 = arith.constant 0 : index
      %c0_8 = arith.constant 0 : index
      %14 = vector.load %arg9[%c0_7, %c0_8] : memref<1x128xf32, #tpu.memory_space<vmem>>, vector<1x128xf32>
      tpu.vector_store %arg9[%c0_7, %c0_8], %13 {strides = array<i32>} : memref<1x128xf32, #tpu.memory_space<vmem>>, vector<1x128xf32>,
    } else {
    }
    %c0_i32_2 = arith.constant 0 : i32
    %5 = arith.cmpi eq, %arg1, %c0_i32_2 : i32
    %6 = arith.extui %5 : i1 to i32
    %c0_i32_3 = arith.constant 0 : i32
    %7 = arith.cmpi ne, %6, %c0_i32_3 : i32
    scf.if %7 {
      %c0 = arith.constant 0 : index
      %c0_5 = arith.constant 0 : index
      %11 = vector.load %arg3[%c0, %c0_5] : memref<512x128xbf16, #tpu.memory_space<vmem>>, vector<512x128xbf16>
      %c0_6 = arith.constant 0 : index
      %c0_7 = arith.constant 0 : index
      %12 = vector.load %arg4[%c0_6, %c0_7] : memref<128x128xbf16, #tpu.memory_space<vmem>>, vector<128x128xbf16>
      %cst = arith.constant dense<0.000000e+00> : vector<512x128xf32>
      %13 = tpu.matmul %11, %12, %cst {dimension_numbers = #tpu.dot_dimension_numbers<[1], [0], [0], [1], [0, 0, 1, 1], [], []>} : vector<512x128xbf16>, vector<128x128xbf16>, vector<512x128xf32> -> vector<512x128xf32>
      %c0_8 = arith.constant 0 : index
      %c0_9 = arith.constant 0 : index
      %14 = vector.load %arg8[%c0_8, %c0_9] : memref<1x128xf32, #tpu.memory_space<vmem>>, vector<1x128xf32>
      %cst_10 = arith.constant dense<0.000000e+00> : vector<128xf32>
      %15 = vector.multi_reduction <add>, %13, %cst_10 [0] : vector<512x128xf32> to vector<128xf32>
      %16 = vector.shape_cast %15 : vector<128xf32> to vector<1x128xf32>
      %17 = arith.addf %14, %16 : vector<1x128xf32>
      %c0_11 = arith.constant 0 : index
      %c0_12 = arith.constant 0 : index
      %18 = vector.load %arg8[%c0_11, %c0_12] : memref<1x128xf32, #tpu.memory_space<vmem>>, vector<1x128xf32>
      tpu.vector_store %arg8[%c0_11, %c0_12], %17 {strides = array<i32>} : memref<1x128xf32, #tpu.memory_space<vmem>>, vector<1x128xf32>,
      %c0_13 = arith.constant 0 : index
      %c0_14 = arith.constant 0 : index
      %19 = vector.load %arg9[%c0_13, %c0_14] : memref<1x128xf32, #tpu.memory_space<vmem>>, vector<1x128xf32>
      %20 = arith.mulf %13, %13 : vector<512x128xf32>
      %cst_15 = arith.constant dense<0.000000e+00> : vector<128xf32>
      %21 = vector.multi_reduction <add>, %20, %cst_15 [0] : vector<512x128xf32> to vector<128xf32>
      %22 = vector.shape_cast %21 : vector<128xf32> to vector<1x128xf32>
      %23 = arith.addf %19, %22 : vector<1x128xf32>
      %c0_16 = arith.constant 0 : index
      %c0_17 = arith.constant 0 : index
      %24 = vector.load %arg9[%c0_16, %c0_17] : memref<1x128xf32, #tpu.memory_space<vmem>>, vector<1x128xf32>
      tpu.vector_store %arg9[%c0_16, %c0_17], %23 {strides = array<i32>} : memref<1x128xf32, #tpu.memory_space<vmem>>, vector<1x128xf32>,
      %25 = arith.index_cast %arg2 : i32 to index
      %c0_18 = arith.constant 0 : index
      %c0_19 = arith.constant 0 : index
      %26 = vector.load %arg12[%25, %c0_18, %c0_19] : memref<1x512x128xf32, #tpu.memory_space<vmem>>, vector<1x512x128xf32>
      %27 = vector.shape_cast %26 : vector<1x512x128xf32> to vector<512x128xf32>
      %28 = vector.shape_cast %13 : vector<512x128xf32> to vector<1x512x128xf32>
      tpu.vector_store %arg12[%25, %c0_18, %c0_19], %28 {strides = array<i32>} : memref<1x512x128xf32, #tpu.memory_space<vmem>>, vector<1x512x128xf32>,
      %c0_i32_20 = arith.constant 0 : i32
      %29 = arith.cmpi eq, %arg2, %c0_i32_20 : i32
      %30 = arith.extui %29 : i1 to i32
      %c0_i32_21 = arith.constant 0 : i32
      %31 = arith.cmpi ne, %30, %c0_i32_21 : i32
      scf.if %31 {
        %c0_22 = arith.constant 0 : index
        %c0_23 = arith.constant 0 : index
        %32 = vector.load %arg8[%c0_22, %c0_23] : memref<1x128xf32, #tpu.memory_space<vmem>>, vector<1x128xf32>
        %cst_24 = arith.constant 0.00222222228 : f32
        %33 = vector.broadcast %cst_24 : f32 to vector<1x128xf32>
        %34 = arith.mulf %32, %33 : vector<1x128xf32>
        %c0_25 = arith.constant 0 : index
        %c0_26 = arith.constant 0 : index
        %35 = vector.load %arg9[%c0_25, %c0_26] : memref<1x128xf32, #tpu.memory_space<vmem>>, vector<1x128xf32>
        %cst_27 = arith.constant 0.00222222228 : f32
        %36 = vector.broadcast %cst_27 : f32 to vector<1x128xf32>
        %37 = arith.mulf %35, %36 : vector<1x128xf32>
        %38 = arith.mulf %34, %34 : vector<1x128xf32>
        %39 = arith.subf %37, %38 : vector<1x128xf32>
        %cst_28 = arith.constant 0.000000e+00 : f32
        %40 = vector.broadcast %cst_28 : f32 to vector<1x128xf32>
        %41 = arith.maximumf %39, %40 : vector<1x128xf32>
        %c0_29 = arith.constant 0 : index
        %c0_30 = arith.constant 0 : index
        %42 = vector.load %arg10[%c0_29, %c0_30] : memref<1x128xf32, #tpu.memory_space<vmem>>, vector<1x128xf32>
        tpu.vector_store %arg10[%c0_29, %c0_30], %34 {strides = array<i32>} : memref<1x128xf32, #tpu.memory_space<vmem>>, vector<1x128xf32>,
        %cst_31 = arith.constant 9.99999974E-6 : f32
        %43 = vector.broadcast %cst_31 : f32 to vector<1x128xf32>
        %44 = arith.addf %41, %43 : vector<1x128xf32>
        %45 = math.rsqrt %44 : vector<1x128xf32>
        %c0_32 = arith.constant 0 : index
        %c0_33 = arith.constant 0 : index
        %46 = vector.load %arg11[%c0_32, %c0_33] : memref<1x128xf32, #tpu.memory_space<vmem>>, vector<1x128xf32>
        tpu.vector_store %arg11[%c0_32, %c0_33], %45 {strides = array<i32>} : memref<1x128xf32, #tpu.memory_space<vmem>>, vector<1x128xf32>,
      } else {
      }
    } else {
    }
    %c1_i32 = arith.constant 1 : i32
    %8 = arith.cmpi eq, %arg1, %c1_i32 : i32
    %9 = arith.extui %8 : i1 to i32
    %c0_i32_4 = arith.constant 0 : i32
    %10 = arith.cmpi ne, %9, %c0_i32_4 : i32
    scf.if %10 {
      %11 = arith.index_cast %arg2 : i32 to index
      %c0 = arith.constant 0 : index
      %c0_5 = arith.constant 0 : index
      %12 = vector.load %arg12[%11, %c0, %c0_5] : memref<1x512x128xf32, #tpu.memory_space<vmem>>, vector<1x512x128xf32>
      %13 = vector.shape_cast %12 : vector<1x512x128xf32> to vector<512x128xf32>
      %c0_6 = arith.constant 0 : index
      %c0_7 = arith.constant 0 : index
      %14 = vector.load %arg11[%c0_6, %c0_7] : memref<1x128xf32, #tpu.memory_space<vmem>>, vector<1x128xf32>
      %c0_8 = arith.constant 0 : index
      %c0_9 = arith.constant 0 : index
      %15 = vector.load %arg5[%c0_8, %c0_9] : memref<1x128xf32, #tpu.memory_space<vmem>>, vector<1x128xf32>
      %16 = arith.mulf %14, %15 : vector<1x128xf32>
      %c0_10 = arith.constant 0 : index
      %c0_11 = arith.constant 0 : index
      %17 = vector.load %arg10[%c0_10, %c0_11] : memref<1x128xf32, #tpu.memory_space<vmem>>, vector<1x128xf32>
      %18 = vector.broadcast %17 : vector<1x128xf32> to vector<512x128xf32>
      %19 = arith.subf %13, %18 : vector<512x128xf32>
      %20 = vector.broadcast %16 : vector<1x128xf32> to vector<512x128xf32>
      %21 = arith.mulf %19, %20 : vector<512x128xf32>
      %c0_12 = arith.constant 0 : index
      %c0_13 = arith.constant 0 : index
      %22 = vector.load %arg6[%c0_12, %c0_13] : memref<1x128xf32, #tpu.memory_space<vmem>>, vector<1x128xf32>
      %23 = vector.broadcast %22 : vector<1x128xf32> to vector<512x128xf32>
      %24 = arith.addf %21, %23 : vector<512x128xf32>
      %cst = arith.constant 0.000000e+00 : f32
      %25 = vector.broadcast %cst : f32 to vector<512x128xf32>
      %26 = arith.maximumf %24, %25 : vector<512x128xf32>
      %27 = arith.truncf %26 : vector<512x128xf32> to vector<512x128xbf16>
      %c0_14 = arith.constant 0 : index
      %c0_15 = arith.constant 0 : index
      %28 = vector.load %arg7[%c0_14, %c0_15] : memref<512x128xbf16, #tpu.memory_space<vmem>>, vector<512x128xbf16>
      tpu.vector_store %arg7[%c0_14, %c0_15], %27 {strides = array<i32>} : memref<512x128xbf16, #tpu.memory_space<vmem>>, vector<512x128xbf16>,
    } else {
    }
    return
  }
  func.func @transform_0(%arg0: i32, %arg1: i32, %arg2: i32) -> (i32, i32) {
    %c1_i32 = arith.constant 1 : i32
    %0 = arith.subi %c1_i32, %arg1 : i32
    %1 = arith.muli %0, %arg2 : i32
    %c0_i32 = arith.constant 0 : i32
    %2 = arith.muli %arg1, %c0_i32 : i32
    %3 = arith.addi %1, %2 : i32
    %c0_i32_0 = arith.constant 0 : i32
    %c0_i32_1 = arith.constant 0 : i32
    return %3, %c0_i32_0 : i32, i32
  }
  func.func @transform_1(%arg0: i32, %arg1: i32, %arg2: i32) -> (i32, i32) {
    %c0_i32 = arith.constant 0 : i32
    %c0_i32_0 = arith.constant 0 : i32
    return %c0_i32, %arg0 : i32, i32
  }
  func.func @transform_2(%arg0: i32, %arg1: i32, %arg2: i32) -> (i32, i32) {
    %c0_i32 = arith.constant 0 : i32
    %c0_i32_0 = arith.constant 0 : i32
    return %c0_i32, %arg0 : i32, i32
  }
  func.func @transform_3(%arg0: i32, %arg1: i32, %arg2: i32) -> (i32, i32) {
    %c0_i32 = arith.constant 0 : i32
    %c0_i32_0 = arith.constant 0 : i32
    return %c0_i32, %arg0 : i32, i32
  }
  func.func @transform_4(%arg0: i32, %arg1: i32, %arg2: i32) -> (i32, i32) {
    %0 = arith.muli %arg2, %arg1 : i32
    %c0_i32 = arith.constant 0 : i32
    return %0, %arg0 : i32, i32
  }
}

</mosaic_0001>

<bundles_post_ra>
// kernel: tpu_custom_call.1
= control target key start
LH: loop header
LB: loop body
LE: loop exit
PB: predicated region body
PF: predicated region fallthrough
CT: control target
= control target key end

     0   :  { %9 = vsyncpa [#allocation8], 0  ;;  %s3285_s0 = inlined_call_operand.hbm [shape: bf16[512,128], index: 0, kind: input, shape index: {}]   ;;  %s3286_s1 = inlined_call_operand.hbm [shape: bf16[128,128], index: 1, kind: input, shape index: {}]   ;;  %s3287_s2 = inlined_call_operand.vmem [shape: f32[1,128], index: 2, kind: input, shape index: {}]   ;;  %s3288_s3 = inlined_call_operand.vmem [shape: f32[1,128], index: 3, kind: input, shape index: {}]   ;;  %s3289_s4 = inlined_call_operand.hbm [shape: bf16[512,128], index: 4, kind: output, shape index: {}]  }
   0x1   :  { %11 = vsyncpa [#allocation8 + $0x1], 0 }
   0x2   :  { %12 = vsyncpa [#allocation11], 0 }
   0x3   :  { %13 = vsyncpa [#allocation9], 0 }
   0x4   :  { %15 = vsyncpa [#allocation9 + $0x1], 0  ;;  %s2787_s15 = smov 0   ;;  %s2789_s16 = smov 0  }
   0x5   :  { %s2791_s17 = smov 0  }
   0x6 LB: > { %s2020_s18 = sadd.s32 4294967295, %s2752_s17   ;;  %s2021_s19 = sadd.s32 4294967294, %s2752_s17   ;;  %s2752_s17 = sphi %s2791_s17, %s21_s17   ;;  %s2748_s16 = sphi %s2789_s16, %s3297_s16   ;;  %s2744_s15 = sphi %s2787_s15, %s3296_s15  }
   0x7   : > { %s36_s20 = sadd.s32 1, %s2748_s16  ;;  %p2022_p0 = scmp.ge.s32.totalorder %s2752_s17, 1 }
   0x8   : > { %p38_p1 = scmp.ge.s32.totalorder %s36_s20, 2  ;;  %p183_p2 = scmp.lt.s32.totalorder %s2752_s17, 3 }
   0x9   : > { %p2809_p3 = scmp.eq.s32.totalorder %s2020_s18, 0  ;;  %s2754_s23 = smov [#allocation10]  }
   0xa   : > { %s3299_s20 = smov (%p38_p1, %s36_s20), 0  ;;  %p2815_p4 = pnand %p2022_p0, %p183_p2 }
   0xb   : > { %s197_s24 = sshll.u32 %s2754_s23, 4  ;;  %p2026_p6 = scmp.ge.s32.totalorder %s2752_s17, 2  ;;  %s198_s24 = int_to_ptr.vmem [resolvable:$true] %s197_s24 }
   0xc   : > { %s3292_s22 = scalar_select %p2815_p4, 1, 0 }
   0xd   : > { %p2548_p5 = pneg %p2815_p4  ;;  %p2561_p8 = scmp.lt.s32.totalorder %s2752_s17, 2 }
   0xe   : > { %p2562_p9 = scmp.eq.s32.totalorder %s2752_s17, 0  ;;  %s2653_s26 = scalar_lea.vmem %s198_s24, 1024 }
   0xf   : > { %p2824_p7 = pnand %p2809_p3, %p2548_p5  ;;  %p2654_p11 = scmp.ne.s32.totalorder %s198_s24, %s2653_s26 }
  0x10   : > { %p2661_p0 = scmp.lt.s32.totalorder %s198_s24, %s198_s24  ;;  %p2662_p1 = scmp.lt.s32.totalorder %s2653_s26, %s2653_s26 }
  0x11   : > { %p2644_p10 = pneg %p2824_p7 }
  0x12   : > { %p2663_p2 = por %p2662_p1, %p2661_p0 }
  0x13   : > { %p2656_p12 = pnand %p2654_p11, %p2644_p10 }
  0x15   : > { %p2657_p13 = pneg %p2656_p12 }
  0x17   : > { %p2664_p4 = pnand %p2663_p2, %p2657_p13 }
  0x19   : > { %2667 = shalt.err (!%p2664_p4)
}
  0x1a   : > { %s2755_s27 = smov 64   ;;  %s2756_s28 = smov 4  }
  0x1b   : > { %2551 = dma.hbm_to_vmem [thread:$0]  (!%p2824_p7), %s3286_s1, 1024, %s198_s24, [#allocation11], %s2755_s27, %s2755_s27, %s2756_s28  }
  0x1c   : > { %s2757_s5 = smov [#allocation7]   ;;  %p2553_p5 = pnand %p2562_p9, %p2561_p8 }
  0x1d   : > { %s236_s6 = sshll.u32 %s2757_s5, 4  ;;  %s237_s6 = int_to_ptr.vmem [resolvable:$true] %s236_s6 }
  0x1e   : > { %p2670_p10 = pneg %p2553_p5  ;;  %s2679_s7 = scalar_lea.vmem %s237_s6, 4096 }
  0x1f   : > { %p2680_p11 = scmp.ne.s32.totalorder %s237_s6, %s2679_s7  ;;  %s2686_s8 = scalar_lea.vmem %s237_s6, 8192 }
  0x20   : > { %p2687_p13 = scmp.lt.s32.totalorder %s237_s6, %s237_s6  ;;  %p2688_p0 = scmp.lt.s32.totalorder %s2686_s8, %s2679_s7 }
  0x21   : > { %p2682_p4 = pnand %p2680_p11, %p2670_p10 }
  0x22   : > { %p2689_p1 = por %p2688_p0, %p2687_p13 }
  0x23   : > { %p2683_p12 = pneg %p2682_p4 }
  0x25   : > { %p2690_p2 = pnand %p2689_p1, %p2683_p12 }
  0x27   : > { %2693 = shalt.err (!%p2690_p2)
}
  0x28   : > { %2555 = dma.hbm_to_vmem [thread:$0]  (!%p2553_p5), %s3285_s0, 4096, %s237_s6, [#allocation8], %s2755_s27, %s2755_s27, %s2756_s28  }
  0x29   : > { %p3294_p7 = scmp.ne.s32.totalorder %s3292_s22, 0 }
  0x2b   : > { %248 = sbr.rel (%p3294_p7) target bundleno = 574 (0x23e), region = 36 }
  0x30   : > { %2731 = dma.done.wait (%p2809_p3), [#allocation8], 4096  }
  0x31   : > { %2733 = vsyncadd (%p2809_p3), [#allocation8], 4294963200 }
  0x32   : > { %2735 = dma.done.wait (%p2809_p3), [#allocation11], 1024  }
  0x33   : > { %2737 = vsyncadd (%p2809_p3), [#allocation11], 4294966272  ;;  %p301_p8 = scmp.eq.s32.totalorder %s2744_s15, 0 }
  0x34   : > { %v2758_v0 = vmov (%p301_p8), 0.0  }
  0x35   : > { %306 = sbr.rel (!%p301_p8) target bundleno = 58 (0x3a), region = 48  ;;  %307 = vst [vmem:[#allocation2] sm:$0x1] (%p301_p8), %v2758_v0  ;;  %308 = vst [vmem:[#allocation3] sm:$0x1] (%p301_p8), %v2758_v0 }
  0x3a PF: > { %p2032_p9 = scmp.ne.s32.totalorder %s2744_s15, 0 }
  0x3c   : > { %311 = sbr.rel (%p2032_p9) target bundleno = 470 (0x1d6), region = 52 }
  0x41   : > { %v2600_v1 = vld [vmem:[#allocation10 + $0x38] sm:$0xff]   ;;  %v2601_v2 = vld [vmem:[#allocation10 + $0x30] sm:$0xff]   ;;  %v2602_v3 = vld [vmem:[#allocation10 + $0x28] sm:$0xff]  }
  0x42   : > { %2440 = vmatprep.subr.bf16.mxu0 %v2600_v1  ;;  %2520 = vmatprep.subr.bf16.mxu1 %v2600_v1  ;;  %v2603_v4 = vld [vmem:[#allocation10 + $0x20] sm:$0xff]   ;;  %v2604_v6 = vld [vmem:[#allocation10 + $0x18] sm:$0xff]   ;;  %v2605_v7 = vld [vmem:[#allocation10 + $0x10] sm:$0xff]  }
  0x43   : > { %2441 = vmatpush3.bf16.msra.mxu0 %v2600_v1  ;;  %2528 = vmatpush3.bf16.msra.mxu1 %v2600_v1  ;;  %v2608_v5 = vld [vmem:[#allocation7] sm:$0xff]   ;;  %v2606_v8 = vld [vmem:[#allocation10 + $0x8] sm:$0xff]   ;;  %v2610_v12 = vld [vmem:[#allocation7 + $0x10] sm:$0xff]  }
  0x44   : > { %2442 = vmatprep.subr.bf16.mxu0 %v2601_v2  ;;  %2521 = vmatprep.subr.bf16.mxu1 %v2601_v2  ;;  %v2607_v9 = vld [vmem:[#allocation10] sm:$0xff]   ;;  %v2609_v11 = vld [vmem:[#allocation7 + $0x8] sm:$0xff]   ;;  %v2626_v14 = vld [vmem:[#allocation7 + $0x90] sm:$0xff]  }
  0x45   : > { %2456 = vmatprep.mubr.bf16.mxu0 %v2608_v5  ;;  %v2624_v10 = vld [vmem:[#allocation7 + $0x80] sm:$0xff]   ;;  %v2625_v13 = vld [vmem:[#allocation7 + $0x88] sm:$0xff]   ;;  %v2611_v15 = vld [vmem:[#allocation7 + $0x18] sm:$0xff]  }
  0x46   : > { %2488 = vmatprep.mubr.bf16.mxu1 %v2624_v10  ;;  %v2612_v16 = vld [vmem:[#allocation7 + $0x20] sm:$0xff]   ;;  %v2627_v17 = vld [vmem:[#allocation7 + $0x98] sm:$0xff]   ;;  %v2613_v19 = vld [vmem:[#allocation7 + $0x28] sm:$0xff]  }
  0x47   : > { %2443 = vmatpush3.bf16.msra.mxu0 %v2601_v2  ;;  %2529 = vmatpush3.bf16.msra.mxu1 %v2601_v2  ;;  %v2628_v18 = vld [vmem:[#allocation7 + $0xa0] sm:$0xff]   ;;  %v2629_v20 = vld [vmem:[#allocation7 + $0xa8] sm:$0xff]   ;;  %v2614_v21 = vld [vmem:[#allocation7 + $0x30] sm:$0xff]  }
  0x48   : > { %2444 = vmatprep.subr.bf16.mxu0 %v2602_v3  ;;  %2522 = vmatprep.subr.bf16.mxu1 %v2602_v3  ;;  %v2630_v22 = vld [vmem:[#allocation7 + $0xb0] sm:$0xff]   ;;  %v2615_v23 = vld [vmem:[#allocation7 + $0x38] sm:$0xff]   ;;  %v2616_v25 = vld [vmem:[#allocation7 + $0x40] sm:$0xff]  }
  0x49   : > { %v2631_v24 = vld [vmem:[#allocation7 + $0xb8] sm:$0xff]   ;;  %v2632_v26 = vld [vmem:[#allocation7 + $0xc0] sm:$0xff]   ;;  %v2617_v27 = vld [vmem:[#allocation7 + $0x48] sm:$0xff]  }
  0x4a   : > { %v2633_v28 = vld [vmem:[#allocation7 + $0xc8] sm:$0xff]   ;;  %v2618_v29 = vld [vmem:[#allocation7 + $0x50] sm:$0xff]   ;;  %v2619_v31 = vld [vmem:[#allocation7 + $0x58] sm:$0xff]  }
  0x4b   : > { %2445 = vmatpush3.bf16.msra.mxu0 %v2602_v3  ;;  %2530 = vmatpush3.bf16.msra.mxu1 %v2602_v3  ;;  %v2634_v30 = vld [vmem:[#allocation7 + $0xd0] sm:$0xff]   ;;  %v2635_v32 = vld [vmem:[#allocation7 + $0xd8] sm:$0xff]   ;;  %v2620_v33 = vld [vmem:[#allocation7 + $0x60] sm:$0xff]  }
  0x4c   : > { %2446 = vmatprep.subr.bf16.mxu0 %v2603_v4  ;;  %2523 = vmatprep.subr.bf16.mxu1 %v2603_v4  ;;  %v2636_v34 = vld [vmem:[#allocation7 + $0xe0] sm:$0xff]   ;;  %v2621_v35 = vld [vmem:[#allocation7 + $0x68] sm:$0xff]   ;;  %v2622_v37 = vld [vmem:[#allocation7 + $0x70] sm:$0xff]  }
  0x4d   : > { %v2637_v36 = vld [vmem:[#allocation7 + $0xe8] sm:$0xff]   ;;  %v2638_v38 = vld [vmem:[#allocation7 + $0xf0] sm:$0xff]   ;;  %v2623_v39 = vld [vmem:[#allocation7 + $0x78] sm:$0xff]  }
  0x4e   : > { %v2639_v40 = vld [vmem:[#allocation7 + $0xf8] sm:$0xff]  }
  0x4f   : > { %2447 = vmatpush3.bf16.msra.mxu0 %v2603_v4  ;;  %2531 = vmatpush3.bf16.msra.mxu1 %v2603_v4 }
  0x50   : > { %2448 = vmatprep.subr.bf16.mxu0 %v2604_v6  ;;  %2524 = vmatprep.subr.bf16.mxu1 %v2604_v6 }
  0x53   : > { %2449 = vmatpush3.bf16.msra.mxu0 %v2604_v6  ;;  %2532 = vmatpush3.bf16.msra.mxu1 %v2604_v6 }
  0x54   : > { %2450 = vmatprep.subr.bf16.mxu0 %v2605_v7  ;;  %2525 = vmatprep.subr.bf16.mxu1 %v2605_v7 }
  0x57   : > { %2451 = vmatpush3.bf16.msra.mxu0 %v2605_v7  ;;  %2533 = vmatpush3.bf16.msra.mxu1 %v2605_v7 }
  0x58   : > { %2452 = vmatprep.subr.bf16.mxu0 %v2606_v8  ;;  %2526 = vmatprep.subr.bf16.mxu1 %v2606_v8 }
  0x5b   : > { %2453 = vmatpush3.bf16.msra.mxu0 %v2606_v8  ;;  %2534 = vmatpush3.bf16.msra.mxu1 %v2606_v8 }
  0x5c   : > { %2454 = vmatprep.subr.bf16.mxu0 %v2607_v9  ;;  %2527 = vmatprep.subr.bf16.mxu1 %v2607_v9 }
  0x5f   : > { %2455 = vmatpush3.bf16.msra.mxu0 %v2607_v9  ;;  %2535 = vmatpush3.bf16.msra.mxu1 %v2607_v9 }
  0x62   : > { %2457 = vmatmul.mubr.bf16.vlgmr.msra.gmra.mxu0 %v2609_v11  ;;  %2489 = vmatmul.mubr.bf16.vlgmr.msra.gmra.mxu1 %v2625_v13 }
  0x63   : > { %2460 = vmatprep.mubr.bf16.mxu0 %v2610_v12  ;;  %2492 = vmatprep.mubr.bf16.mxu1 %v2626_v14 }
  0x6a   : > { %2461 = vmatmul.mubr.bf16.gmra.mxu0 %v2611_v15  ;;  %2493 = vmatmul.mubr.bf16.gmra.mxu1 %v2627_v17 }
  0x6b   : > { %2464 = vmatprep.mubr.bf16.mxu0 %v2612_v16  ;;  %2496 = vmatprep.mubr.bf16.mxu1 %v2628_v18 }
  0x72   : > { %2465 = vmatmul.mubr.bf16.gmra.mxu0 %v2613_v19  ;;  %2497 = vmatmul.mubr.bf16.gmra.mxu1 %v2629_v20 }
  0x73   : > { %2468 = vmatprep.mubr.bf16.mxu0 %v2614_v21  ;;  %2500 = vmatprep.mubr.bf16.mxu1 %v2630_v22 }
  0x7a   : > { %2469 = vmatmul.mubr.bf16.gmra.mxu0 %v2615_v23  ;;  %2501 = vmatmul.mubr.bf16.gmra.mxu1 %v2631_v24 }
  0x7b   : > { %2472 = vmatprep.mubr.bf16.mxu0 %v2616_v25  ;;  %2504 = vmatprep.mubr.bf16.mxu1 %v2632_v26 }
  0x82   : > { %2473 = vmatmul.mubr.bf16.gmra.mxu0 %v2617_v27  ;;  %2505 = vmatmul.mubr.bf16.gmra.mxu1 %v2633_v28 }
  0x83   : > { %2476 = vmatprep.mubr.bf16.mxu0 %v2618_v29  ;;  %2508 = vmatprep.mubr.bf16.mxu1 %v2634_v30 }
  0x8a   : > { %2477 = vmatmul.mubr.bf16.gmra.mxu0 %v2619_v31  ;;  %2509 = vmatmul.mubr.bf16.gmra.mxu1 %v2635_v32 }
  0x8b   : > { %2480 = vmatprep.mubr.bf16.mxu0 %v2620_v33  ;;  %2512 = vmatprep.mubr.bf16.mxu1 %v2636_v34 }
  0x92   : > { %2481 = vmatmul.mubr.bf16.gmra.mxu0 %v2621_v35  ;;  %2513 = vmatmul.mubr.bf16.gmra.mxu1 %v2637_v36 }
  0x93   : > { %2484 = vmatprep.mubr.bf16.mxu0 %v2622_v37  ;;  %2516 = vmatprep.mubr.bf16.mxu1 %v2638_v38 }
  0x9a   : > { %2485 = vmatmul.mubr.bf16.gmra.mxu0 %v2623_v39  ;;  %2517 = vmatmul.mubr.bf16.gmra.mxu1 %v2639_v40 }
 0x122   : > { %v2458_v41 = vpop.f32.mrf.mxu0  ;;  %v2856_v42 = vpop.f32.mrf.mxu1 }
 0x123   : > { %1133 = vst [vmem:[#allocation6 + $0xd8] sm:$0xff] %v2458_v41  ;;  %1165 = vst [vmem:[#allocation6 + $0x100] sm:$0xff] %v2856_v42  ;;  %v996_v54 = vmul.f32 %v2458_v41, %v2458_v41 }
 0x124   : > { %v666_v43 = vpop.f32.mrf.mxu0  ;;  %v2859_v44 = vpop.f32.mrf.mxu1 }
 0x125   : > { %1131 = vst [vmem:[#allocation6 + $0xb0] sm:$0xff] %v666_v43  ;;  %1163 = vst [vmem:[#allocation6 + $0x148] sm:$0xff] %v2859_v44  ;;  %v994_v49 = vmul.f32 %v666_v43, %v666_v43 }
 0x126   : > { %v2459_v45 = vpop.f32.mrf.mxu0  ;;  %v2862_v46 = vpop.f32.mrf.mxu1 }
 0x127   : > { %1134 = vst [vmem:[#allocation6 + $0x18] sm:$0xff] %v2459_v45  ;;  %1166 = vst [vmem:[#allocation6 + $0xc8] sm:$0xff] %v2862_v46  ;;  %v997_v59 = vmul.f32 %v2459_v45, %v2459_v45 }
 0x128   : > { %v669_v47 = vpop.f32.mrf.mxu0  ;;  %v2865_v48 = vpop.f32.mrf.mxu1 }
 0x129   : > { %v922_v50 = vadd.f32 %v669_v47, %v666_v43  ;;  %v995_v51 = vmul.f32 %v669_v47, %v669_v47  ;;  %1132 = vst [vmem:[#allocation6 + $0x1b0] sm:$0xff] %v669_v47  ;;  %1164 = vst [vmem:[#allocation6 + $0x1d0] sm:$0xff] %v2865_v48 }
 0x12a   : > { %v2462_v52 = vpop.f32.mrf.mxu0  ;;  %v2868_v53 = vpop.f32.mrf.mxu1 }
 0x12b   : > { %v923_v55 = vadd.f32 %v2458_v41, %v922_v50  ;;  %v1058_v56 = vadd.f32 %v995_v51, %v994_v49  ;;  %1137 = vst [vmem:[#allocation6 + $0x130] sm:$0xff] %v2462_v52  ;;  %1169 = vst [vmem:[#allocation6 + $0x20] sm:$0xff] %v2868_v53  ;;  %v1000_v10 = vmul.f32 %v2462_v52, %v2462_v52 }
 0x12c   : > { %v682_v57 = vpop.f32.mrf.mxu0  ;;  %v2871_v58 = vpop.f32.mrf.mxu1 }
 0x12d   : > { %v1059_v60 = vadd.f32 %v1058_v56, %v996_v54  ;;  %v924_v61 = vadd.f32 %v2459_v45, %v923_v55  ;;  %1135 = vst [vmem:[#allocation6 + $0x50] sm:$0xff] %v682_v57  ;;  %1167 = vst [vmem:[#allocation6 + $0x40] sm:$0xff] %v2871_v58  ;;  %v998_v1 = vmul.f32 %v682_v57, %v682_v57 }
 0x12e   : > { %v2463_v62 = vpop.f32.mrf.mxu0  ;;  %v2874_v63 = vpop.f32.mrf.mxu1 }
 0x12f   : > { %v925_v0 = vadd.f32 %v924_v61, %v682_v57  ;;  %v1060_v2 = vadd.f32 %v1059_v60, %v997_v59  ;;  %1138 = vst [vmem:[#allocation6 + $0x48] sm:$0xff] %v2463_v62  ;;  %1170 = vst [vmem:[#allocation6 + $0x128] sm:$0xff] %v2874_v63  ;;  %v1001_v15 = vmul.f32 %v2463_v62, %v2463_v62 }
 0x130   : > { %v685_v3 = vpop.f32.mrf.mxu0  ;;  %v2877_v4 = vpop.f32.mrf.mxu1 }
 0x131   : > { %v1061_v5 = vadd.f32 %v1060_v2, %v998_v1  ;;  %v926_v6 = vadd.f32 %v925_v0, %v685_v3  ;;  %v999_v7 = vmul.f32 %v685_v3, %v685_v3  ;;  %1136 = vst [vmem:[#allocation6 + $0x168] sm:$0xff] %v685_v3  ;;  %1168 = vst [vmem:[#allocation6 + $0x1f8] sm:$0xff] %v2877_v4 }
 0x132   : > { %v2466_v8 = vpop.f32.mrf.mxu0  ;;  %v2880_v9 = vpop.f32.mrf.mxu1 }
 0x133   : > { %v927_v11 = vadd.f32 %v2462_v52, %v926_v6  ;;  %v1062_v12 = vadd.f32 %v1061_v5, %v999_v7  ;;  %1141 = vst [vmem:[#allocation6 + $0x118] sm:$0xff] %v2466_v8  ;;  %1173 = vst [vmem:[#allocation6 + $0xe8] sm:$0xff] %v2880_v9  ;;  %v1004_v30 = vmul.f32 %v2466_v8, %v2466_v8 }
 0x134   : > { %v698_v13 = vpop.f32.mrf.mxu0  ;;  %v2883_v14 = vpop.f32.mrf.mxu1 }
 0x135   : > { %v1063_v16 = vadd.f32 %v1062_v12, %v1000_v10  ;;  %v928_v17 = vadd.f32 %v2463_v62, %v927_v11  ;;  %1139 = vst [vmem:[#allocation6 + $0x180] sm:$0xff] %v698_v13  ;;  %1171 = vst [vmem:[#allocation6 + $0x1a0] sm:$0xff] %v2883_v14  ;;  %v1002_v21 = vmul.f32 %v698_v13, %v698_v13 }
 0x136   : > { %v2467_v18 = vpop.f32.mrf.mxu0  ;;  %v2886_v19 = vpop.f32.mrf.mxu1 }
 0x137   : > { %v929_v20 = vadd.f32 %v928_v17, %v698_v13  ;;  %v1064_v22 = vadd.f32 %v1063_v16, %v1001_v15  ;;  %1142 = vst [vmem:[#allocation6 + $0x98] sm:$0xff] %v2467_v18  ;;  %1174 = vst [vmem:[#allocation6 + $0x78] sm:$0xff] %v2886_v19  ;;  %v1005_v35 = vmul.f32 %v2467_v18, %v2467_v18 }
 0x138   : > { %v701_v23 = vpop.f32.mrf.mxu0  ;;  %v2889_v24 = vpop.f32.mrf.mxu1 }
 0x139   : > { %v1065_v25 = vadd.f32 %v1064_v22, %v1002_v21  ;;  %v930_v26 = vadd.f32 %v929_v20, %v701_v23  ;;  %v1003_v27 = vmul.f32 %v701_v23, %v701_v23  ;;  %1140 = vst [vmem:[#allocation6 + $0x110] sm:$0xff] %v701_v23  ;;  %1172 = vst [vmem:[#allocation6 + $0x1f0] sm:$0xff] %v2889_v24 }
 0x13a   : > { %v2470_v28 = vpop.f32.mrf.mxu0  ;;  %v2892_v29 = vpop.f32.mrf.mxu1 }
 0x13b   : > { %v931_v31 = vadd.f32 %v2466_v8, %v930_v26  ;;  %v1066_v32 = vadd.f32 %v1065_v25, %v1003_v27  ;;  %1145 = vst [vmem:[#allocation6 + $0x108] sm:$0xff] %v2470_v28  ;;  %1177 = vst [vmem:[#allocation6 + $0x1d8] sm:$0xff] %v2892_v29  ;;  %v1008_v55 = vmul.f32 %v2470_v28, %v2470_v28 }
 0x13c   : > { %v714_v33 = vpop.f32.mrf.mxu0  ;;  %v2895_v34 = vpop.f32.mrf.mxu1 }
 0x13d   : > { %v1067_v36 = vadd.f32 %v1066_v32, %v1004_v30  ;;  %v932_v37 = vadd.f32 %v2467_v18, %v931_v31  ;;  %1143 = vst [vmem:[#allocation6 + $0x120] sm:$0xff] %v714_v33  ;;  %1175 = vst [vmem:[#allocation6 + $0x70] sm:$0xff] %v2895_v34  ;;  %v1006_v41 = vmul.f32 %v714_v33, %v714_v33 }
 0x13e   : > { %v2471_v38 = vpop.f32.mrf.mxu0  ;;  %v2898_v39 = vpop.f32.mrf.mxu1 }
 0x13f   : > { %v933_v40 = vadd.f32 %v932_v37, %v714_v33  ;;  %v1068_v43 = vadd.f32 %v1067_v36, %v1005_v35  ;;  %1146 = vst [vmem:[#allocation6 + $0x60] sm:$0xff] %v2471_v38  ;;  %1178 = vst [vmem:[#allocation6 + $0xd0] sm:$0xff] %v2898_v39  ;;  %v1009_v61 = vmul.f32 %v2471_v38, %v2471_v38 }
 0x140   : > { %v717_v45 = vpop.f32.mrf.mxu0  ;;  %v2901_v47 = vpop.f32.mrf.mxu1 }
 0x141   : > { %v1069_v49 = vadd.f32 %v1068_v43, %v1006_v41  ;;  %v934_v50 = vadd.f32 %v933_v40, %v717_v45  ;;  %v1007_v51 = vmul.f32 %v717_v45, %v717_v45  ;;  %1144 = vst [vmem:[#allocation6 + $0x150] sm:$0xff] %v717_v45  ;;  %1176 = vst [vmem:[#allocation6 + $0x90] sm:$0xff] %v2901_v47 }
 0x142   : > { %v2474_v52 = vpop.f32.mrf.mxu0  ;;  %v2904_v54 = vpop.f32.mrf.mxu1 }
 0x143   : > { %v935_v56 = vadd.f32 %v2470_v28, %v934_v50  ;;  %v1070_v57 = vadd.f32 %v1069_v49, %v1007_v51  ;;  %1149 = vst [vmem:[#allocation6 + $0x138] sm:$0xff] %v2474_v52  ;;  %1181 = vst [vmem:[#allocation6 + $0xa8] sm:$0xff] %v2904_v54  ;;  %v1012_v16 = vmul.f32 %v2474_v52, %v2474_v52 }
 0x144   : > { %v730_v59 = vpop.f32.mrf.mxu0  ;;  %v2907_v60 = vpop.f32.mrf.mxu1 }
 0x145   : > { %v1071_v62 = vadd.f32 %v1070_v57, %v1008_v55  ;;  %v936_v0 = vadd.f32 %v2471_v38, %v935_v56  ;;  %1147 = vst [vmem:[#allocation6 + $0xe0] sm:$0xff] %v730_v59  ;;  %1179 = vst [vmem:[#allocation6 + $0xb8] sm:$0xff] %v2907_v60  ;;  %v1010_v5 = vmul.f32 %v730_v59, %v730_v59 }
 0x146   : > { %v2475_v1 = vpop.f32.mrf.mxu0  ;;  %v2910_v2 = vpop.f32.mrf.mxu1 }
 0x147   : > { %v937_v3 = vadd.f32 %v936_v0, %v730_v59  ;;  %v1072_v6 = vadd.f32 %v1071_v62, %v1009_v61  ;;  %1150 = vst [vmem:[#allocation6 + $0x140] sm:$0xff] %v2475_v1  ;;  %1182 = vst [vmem:[#allocation6 + $0x1c8] sm:$0xff] %v2910_v2  ;;  %v1013_v22 = vmul.f32 %v2475_v1, %v2475_v1 }
 0x148   : > { %v733_v7 = vpop.f32.mrf.mxu0  ;;  %v2913_v8 = vpop.f32.mrf.mxu1 }
 0x149   : > { %v1073_v10 = vadd.f32 %v1072_v6, %v1010_v5  ;;  %v938_v11 = vadd.f32 %v937_v3, %v733_v7  ;;  %v1011_v12 = vmul.f32 %v733_v7, %v733_v7  ;;  %1148 = vst [vmem:[#allocation6 + $0x188] sm:$0xff] %v733_v7  ;;  %1180 = vst [vmem:[#allocation6 + $0x88] sm:$0xff] %v2913_v8 }
 0x14a   : > { %v2478_v13 = vpop.f32.mrf.mxu0  ;;  %v2916_v15 = vpop.f32.mrf.mxu1 }
 0x14b   : > { %v939_v17 = vadd.f32 %v2474_v52, %v938_v11  ;;  %v1074_v18 = vadd.f32 %v1073_v10, %v1011_v12  ;;  %1153 = vst [vmem:[#allocation6 + $0x1b8] sm:$0xff] %v2478_v13  ;;  %1185 = vst [vmem:[#allocation6 + $0x68] sm:$0xff] %v2916_v15  ;;  %v1016_v41 = vmul.f32 %v2478_v13, %v2478_v13 }
 0x14c   : > { %v746_v20 = vpop.f32.mrf.mxu0  ;;  %v2919_v21 = vpop.f32.mrf.mxu1 }
 0x14d   : > { %v1075_v23 = vadd.f32 %v1074_v18, %v1012_v16  ;;  %v940_v25 = vadd.f32 %v2475_v1, %v939_v17  ;;  %1151 = vst [vmem:[#allocation6 + $0x80] sm:$0xff] %v746_v20  ;;  %1183 = vst [vmem:[#allocation6 + $0x170] sm:$0xff] %v2919_v21  ;;  %v1014_v30 = vmul.f32 %v746_v20, %v746_v20 }
 0x14e   : > { %v2479_v26 = vpop.f32.mrf.mxu0  ;;  %v2922_v27 = vpop.f32.mrf.mxu1 }
 0x14f   : > { %v941_v28 = vadd.f32 %v940_v25, %v746_v20  ;;  %v1076_v31 = vadd.f32 %v1075_v23, %v1013_v22  ;;  %1154 = vst [vmem:[#allocation6 + $0x28] sm:$0xff] %v2479_v26  ;;  %1186 = vst [vmem:[#allocation6 + $0x190] sm:$0xff] %v2922_v27  ;;  %v1017_v51 = vmul.f32 %v2479_v26, %v2479_v26 }
 0x150   : > { %v749_v32 = vpop.f32.mrf.mxu0  ;;  %v2925_v33 = vpop.f32.mrf.mxu1 }
 0x151   : > { %v1077_v35 = vadd.f32 %v1076_v31, %v1014_v30  ;;  %v942_v36 = vadd.f32 %v941_v28, %v749_v32  ;;  %v1015_v37 = vmul.f32 %v749_v32, %v749_v32  ;;  %1152 = vst [vmem:[#allocation6 + $0x1a8] sm:$0xff] %v749_v32  ;;  %1184 = vst [vmem:[#allocation6 + $0x178] sm:$0xff] %v2925_v33 }
 0x152   : > { %v2482_v38 = vpop.f32.mrf.mxu0  ;;  %v2928_v40 = vpop.f32.mrf.mxu1 }
 0x153   : > { %v943_v43 = vadd.f32 %v2478_v13, %v942_v36  ;;  %v1078_v45 = vadd.f32 %v1077_v35, %v1015_v37  ;;  %1157 = vst [vmem:[#allocation6 + $0x160] sm:$0xff] %v2482_v38  ;;  %1189 = vst [vmem:[#allocation6 + $0xc0] sm:$0xff] %v2928_v40  ;;  %v1020_v11 = vmul.f32 %v2482_v38, %v2482_v38 }
 0x154   : > { %v762_v49 = vpop.f32.mrf.mxu0  ;;  %v2931_v50 = vpop.f32.mrf.mxu1 }
 0x155   : > { %v1079_v52 = vadd.f32 %v1078_v45, %v1016_v41  ;;  %v944_v55 = vadd.f32 %v2479_v26, %v943_v43  ;;  %1155 = vst [vmem:[#allocation6 + $0x1e8] sm:$0xff] %v762_v49  ;;  %1187 = vst [vmem:[#allocation6 + $0x198] sm:$0xff] %v2931_v50  ;;  %v1018_v61 = vmul.f32 %v762_v49, %v762_v49 }
 0x156   : > { %v2483_v56 = vpop.f32.mrf.mxu0  ;;  %v2934_v57 = vpop.f32.mrf.mxu1 }
 0x157   : > { %v945_v59 = vadd.f32 %v944_v55, %v762_v49  ;;  %v1080_v62 = vadd.f32 %v1079_v52, %v1017_v51  ;;  %1158 = vst [vmem:[#allocation6 + $0x30] sm:$0xff] %v2483_v56  ;;  %1190 = vst [vmem:[#allocation6 + $0x1c0] sm:$0xff] %v2934_v57  ;;  %v1021_v18 = vmul.f32 %v2483_v56, %v2483_v56 }
 0x158   : > { %v765_v0 = vpop.f32.mrf.mxu0  ;;  %v2937_v1 = vpop.f32.mrf.mxu1  ;;  %v1026_v52 = vmul.f32 %v2859_v44, %v2859_v44 }
 0x159   : > { %v1081_v3 = vadd.f32 %v1080_v62, %v1018_v61  ;;  %v946_v5 = vadd.f32 %v945_v59, %v765_v0  ;;  %v1019_v6 = vmul.f32 %v765_v0, %v765_v0  ;;  %1156 = vst [vmem:[#allocation6 + $0xf8] sm:$0xff] %v765_v0  ;;  %1188 = vst [vmem:[#allocation6 + $0x38] sm:$0xff] %v2937_v1 }
 0x15a   : > { %v2486_v7 = vpop.f32.mrf.mxu0  ;;  %v2940_v10 = vpop.f32.mrf.mxu1  ;;  %v1027_v61 = vmul.f32 %v2865_v48, %v2865_v48  ;;  %v1028_v0 = vmul.f32 %v2856_v42, %v2856_v42 }
 0x15b   : > { %v947_v12 = vadd.f32 %v2482_v38, %v946_v5  ;;  %v1082_v13 = vadd.f32 %v1081_v3, %v1019_v6  ;;  %1161 = vst [vmem:[#allocation6 + $0xf0] sm:$0xff] %v2486_v7  ;;  %1193 = vst [vmem:[#allocation6 + $0x58] sm:$0xff] %v2940_v10  ;;  %v1024_v38 = vmul.f32 %v2486_v7, %v2486_v7 }
 0x15c   : > { %v778_v16 = vpop.f32.mrf.mxu0  ;;  %v2943_v17 = vpop.f32.mrf.mxu1  ;;  %v1029_v6 = vmul.f32 %v2862_v46, %v2862_v46 }
 0x15d   : > { %v1083_v20 = vadd.f32 %v1082_v13, %v1020_v11  ;;  %v948_v22 = vadd.f32 %v2483_v56, %v947_v12  ;;  %1159 = vst [vmem:[#allocation6 + $0x1e0] sm:$0xff] %v778_v16  ;;  %1191 = vst [vmem:[#allocation6 + $0x158] sm:$0xff] %v2943_v17  ;;  %v1022_v28 = vmul.f32 %v778_v16, %v778_v16 }
 0x15e   : > { %v2487_v23 = vpop.f32.mrf.mxu0  ;;  %v2946_v25 = vpop.f32.mrf.mxu1  ;;  %v1030_v12 = vmul.f32 %v2871_v58, %v2871_v58 }
 0x15f   : > { %v949_v26 = vadd.f32 %v948_v22, %v778_v16  ;;  %v1084_v30 = vadd.f32 %v1083_v20, %v1021_v18  ;;  %1162 = vst [vmem:[#allocation6 + $0x8] sm:$0xff] %v2487_v23  ;;  %1194 = vst [vmem:[#allocation6 + $0xa0] sm:$0xff] %v2946_v25  ;;  %v1025_v45 = vmul.f32 %v2487_v23, %v2487_v23 }
 0x160   : > { %v781_v31 = vpop.f32.mrf.mxu0  ;;  %v2949_v32 = vpop.f32.mrf.mxu1  ;;  %v1031_v18 = vmul.f32 %v2877_v4, %v2877_v4 }
 0x161   : > { %v1085_v35 = vadd.f32 %v1084_v30, %v1022_v28  ;;  %v950_v36 = vadd.f32 %v949_v26, %v781_v31  ;;  %v1023_v37 = vmul.f32 %v781_v31, %v781_v31  ;;  %1160 = vst [vmem:[#allocation6] sm:$0xff] %v781_v31  ;;  %1192 = vst [vmem:[#allocation6 + $0x10] sm:$0xff] %v2949_v32 }
 0x162   : > { %v1034_v28 = vmul.f32 %v2883_v14, %v2883_v14 }
 0x163   : > { %v951_v41 = vadd.f32 %v2486_v7, %v950_v36  ;;  %v1086_v43 = vadd.f32 %v1085_v35, %v1023_v37  ;;  %v1035_v35 = vmul.f32 %v2889_v24, %v2889_v24 }
 0x165   : > { %v952_v49 = vadd.f32 %v2487_v23, %v951_v41  ;;  %v1087_v51 = vadd.f32 %v1086_v43, %v1024_v38  ;;  %v1038_v43 = vmul.f32 %v2895_v34, %v2895_v34 }
 0x167   : > { %v1088_v55 = vadd.f32 %v1087_v51, %v1025_v45  ;;  %v953_v56 = vadd.f32 %v952_v49, %v2859_v44  ;;  %v1039_v51 = vmul.f32 %v2901_v47, %v2901_v47 }
 0x169   : > { %v954_v59 = vadd.f32 %v953_v56, %v2865_v48  ;;  %v1089_v62 = vadd.f32 %v1088_v55, %v1026_v52 }
 0x16b   : > { %v955_v3 = vadd.f32 %v2856_v42, %v954_v59  ;;  %v1090_v5 = vadd.f32 %v1089_v62, %v1027_v61  ;;  %v1032_v42 = vmul.f32 %v2868_v53, %v2868_v53  ;;  %v1042_v61 = vmul.f32 %v2907_v60, %v2907_v60 }
 0x16d   : > { %v1091_v7 = vadd.f32 %v1090_v5, %v1028_v0  ;;  %v956_v11 = vadd.f32 %v2862_v46, %v955_v3  ;;  %v1033_v46 = vmul.f32 %v2874_v63, %v2874_v63  ;;  %v1043_v3 = vmul.f32 %v2913_v8, %v2913_v8 }
 0x16f   : > { %v957_v44 = vadd.f32 %v956_v11, %v2871_v58  ;;  %v1092_v13 = vadd.f32 %v1091_v7, %v1029_v6 }
 0x171   : > { %v1093_v48 = vadd.f32 %v1092_v13, %v1030_v12  ;;  %v958_v16 = vadd.f32 %v957_v44, %v2877_v4  ;;  %v1046_v44 = vmul.f32 %v2919_v21, %v2919_v21 }
 0x173   : > { %v959_v20 = vadd.f32 %v2868_v53, %v958_v16  ;;  %v1094_v22 = vadd.f32 %v1093_v48, %v1031_v18  ;;  %v1036_v53 = vmul.f32 %v2880_v9, %v2880_v9  ;;  %v1047_v48 = vmul.f32 %v2925_v33, %v2925_v33 }
 0x175   : > { %v1095_v23 = vadd.f32 %v1094_v22, %v1032_v42  ;;  %v960_v26 = vadd.f32 %v2874_v63, %v959_v20  ;;  %v1037_v63 = vmul.f32 %v2886_v19, %v2886_v19  ;;  %v1050_v22 = vmul.f32 %v2931_v50, %v2931_v50 }
 0x177   : > { %v961_v58 = vadd.f32 %v960_v26, %v2883_v14  ;;  %v1096_v30 = vadd.f32 %v1095_v23, %v1033_v46  ;;  %v1051_v26 = vmul.f32 %v2937_v1, %v2937_v1 }
 0x179   : > { %v1097_v31 = vadd.f32 %v1096_v30, %v1034_v28  ;;  %v962_v4 = vadd.f32 %v961_v58, %v2889_v24 }
 0x17b   : > { %v963_v36 = vadd.f32 %v2880_v9, %v962_v4  ;;  %v1098_v37 = vadd.f32 %v1097_v31, %v1035_v35  ;;  %v1040_v9 = vmul.f32 %v2892_v29, %v2892_v29  ;;  %v1054_v4 = vmul.f32 %v2943_v17, %v2943_v17 }
 0x17d   : > { %v1099_v38 = vadd.f32 %v1098_v37, %v1036_v53  ;;  %v964_v41 = vadd.f32 %v2886_v19, %v963_v36  ;;  %v1041_v19 = vmul.f32 %v2898_v39, %v2898_v39  ;;  %v1055_v36 = vmul.f32 %v2949_v32, %v2949_v32 }
 0x17f   : > { %v965_v14 = vadd.f32 %v964_v41, %v2895_v34  ;;  %v1100_v45 = vadd.f32 %v1099_v38, %v1037_v63 }
 0x181   : > { %v1101_v49 = vadd.f32 %v1100_v45, %v1038_v43  ;;  %v966_v24 = vadd.f32 %v965_v14, %v2901_v47 }
 0x183   : > { %v967_v52 = vadd.f32 %v2892_v29, %v966_v24  ;;  %v1102_v55 = vadd.f32 %v1101_v49, %v1039_v51  ;;  %v1044_v29 = vmul.f32 %v2904_v54, %v2904_v54 }
 0x185   : > { %v1103_v56 = vadd.f32 %v1102_v55, %v1040_v9  ;;  %v968_v59 = vadd.f32 %v2898_v39, %v967_v52  ;;  %v1045_v39 = vmul.f32 %v2910_v2, %v2910_v2  ;;  %v921_v55 = vld [vmem:[#allocation2] sm:$0x1] }
 0x187   : > { %v969_v34 = vadd.f32 %v968_v59, %v2907_v60  ;;  %v1104_v62 = vadd.f32 %v1103_v56, %v1041_v19  ;;  %v993_v56 = vld [vmem:[#allocation3] sm:$0x1] }
 0x189   : > { %v1105_v0 = vadd.f32 %v1104_v62, %v1042_v61  ;;  %v970_v47 = vadd.f32 %v969_v34, %v2913_v8 }
 0x18b   : > { %v971_v5 = vadd.f32 %v2904_v54, %v970_v47  ;;  %v1106_v6 = vadd.f32 %v1105_v0, %v1043_v3  ;;  %v1048_v54 = vmul.f32 %v2916_v15, %v2916_v15 }
 0x18d   : > { %v1107_v7 = vadd.f32 %v1106_v6, %v1044_v29  ;;  %v972_v11 = vadd.f32 %v2910_v2, %v971_v5  ;;  %v1049_v2 = vmul.f32 %v2922_v27, %v2922_v27 }
 0x18f   : > { %v973_v60 = vadd.f32 %v972_v11, %v2919_v21  ;;  %v1108_v12 = vadd.f32 %v1107_v7, %v1045_v39 }
 0x191   : > { %v1109_v13 = vadd.f32 %v1108_v12, %v1046_v44  ;;  %v974_v8 = vadd.f32 %v973_v60, %v2925_v33 }
 0x193   : > { %v975_v16 = vadd.f32 %v2916_v15, %v974_v8  ;;  %v1110_v18 = vadd.f32 %v1109_v13, %v1047_v48  ;;  %v1052_v15 = vmul.f32 %v2928_v40, %v2928_v40 }
 0x195   : > { %v1111_v42 = vadd.f32 %v1110_v18, %v1048_v54  ;;  %v976_v20 = vadd.f32 %v2922_v27, %v975_v16  ;;  %v1053_v27 = vmul.f32 %v2934_v57, %v2934_v57 }
 0x197   : > { %v977_v21 = vadd.f32 %v976_v20, %v2931_v50  ;;  %v1112_v46 = vadd.f32 %v1111_v42, %v1049_v2 }
 0x199   : > { %v1113_v23 = vadd.f32 %v1112_v46, %v1050_v22  ;;  %v978_v33 = vadd.f32 %v977_v21, %v2937_v1 }
 0x19b   : > { %v979_v58 = vadd.f32 %v2928_v40, %v978_v33  ;;  %v1114_v28 = vadd.f32 %v1113_v23, %v1051_v26  ;;  %v1056_v40 = vmul.f32 %v2940_v10, %v2940_v10 }
 0x19d   : > { %v1115_v30 = vadd.f32 %v1114_v28, %v1052_v15  ;;  %v980_v31 = vadd.f32 %v2934_v57, %v979_v58  ;;  %v1057_v57 = vmul.f32 %v2946_v25, %v2946_v25 }
 0x19f   : > { %v981_v50 = vadd.f32 %v980_v31, %v2943_v17  ;;  %v1116_v35 = vadd.f32 %v1115_v30, %v1053_v27 }
 0x1a1   : > { %v1117_v53 = vadd.f32 %v1116_v35, %v1054_v4  ;;  %v982_v1 = vadd.f32 %v981_v50, %v2949_v32 }
 0x1a3   : > { %v983_v37 = vadd.f32 %v2940_v10, %v982_v1  ;;  %v1118_v63 = vadd.f32 %v1117_v53, %v1055_v36 }
 0x1a5   : > { %v984_v38 = vadd.f32 %v2946_v25, %v983_v37  ;;  %v1119_v41 = vadd.f32 %v1118_v63, %v1056_v40 }
 0x1a7   : > { %v985_v17 = vrot.slane %v984_v38, 4  ;;  %v1120_v14 = vadd.f32 %v1119_v41, %v1057_v57 }
 0x1a9   : > { %v986_v43 = vadd.f32 %v985_v17, %v984_v38  ;;  %v1121_v45 = vrot.slane %v1120_v14, 4 }
 0x1ab   : > { %v987_v49 = vrot.slane %v986_v43, 2  ;;  %v1122_v24 = vadd.f32 %v1121_v45, %v1120_v14 }
 0x1ad   : > { %v988_v51 = vadd.f32 %v987_v49, %v986_v43  ;;  %v1123_v32 = vrot.slane %v1122_v24, 2 }
 0x1af   : > { %v989_v9 = vrot.slane %v988_v51, 1  ;;  %v1124_v52 = vadd.f32 %v1123_v32, %v1122_v24 }
 0x1b1   : > { %v990_v19 = vadd.f32 %v989_v9, %v988_v51  ;;  %v1125_v10 = vrot.slane %v1124_v52, 1 }
 0x1b3   : > { %v991_v59 = vadd.f32 %v990_v19, %v921_v55  ;;  %v1126_v34 = vadd.f32 %v1125_v10, %v1124_v52 }
 0x1b5   : > { %992 = vst [vmem:[#allocation2] sm:$0x1] %v991_v59  ;;  %v1127_v61 = vadd.f32 %v1126_v34, %v993_v56 }
 0x1b7   : > { %1128 = vst [vmem:[#allocation3] sm:$0x1] %v1127_v61 }
 0x1bc   : > { %v1198_v25 = vld [vmem:[#allocation2] sm:$0x1] }
 0x1bd   : > { %v1199_v62 = vmul.f32 0.0022222223, %v1198_v25 }
 0x1be   : > { %v1200_v0 = vld [vmem:[#allocation3] sm:$0x1] }
 0x1bf   : > { %v1201_v47 = vmul.f32 0.0022222223, %v1200_v0  ;;  %v1202_v3 = vmul.f32 %v1199_v62, %v1199_v62  ;;  %1205 = vst [vmem:[#allocation4] sm:$0x1] %v1199_v62 }
 0x1c1   : > { %v1203_v29 = vsub.f32 %v1201_v47, %v1202_v3 }
 0x1c3   : > { %v1204_v5 = vmax.f32 %v1203_v29, 0.0 }
 0x1c5   : > { %v1206_v6 = vadd.f32 1e-05, %v1204_v5 }
 0x1c7   : > { %2640 = vrsqrt.f32 %v1206_v6 }
 0x1d4   : > { %v2641_v39 = vpop.eup %2640 }
 0x1d5   : > { %1208 = vst [vmem:[#allocation5] sm:$0x1] %v2641_v39 }
 0x1d6 PF: > { %p2073_p3 = scmp.ne.s32.totalorder %s2744_s15, 1 }
 0x1d8   : > { %1212 = sbr.rel (%p2073_p3) target bundleno = 560 (0x230), region = 60 }
 0x1dd   : > { %v1215_v7 = vld [vmem:[#allocation6 + $0xb0] sm:$0xff]  ;;  %v1279_v60 = vld [vmem:[#allocation5] sm:$0x1]  ;;  %v1354_v44 = vlaneseq  ;;  %v1280_v12 = vld [vmem:[%s3287_s2] sm:$0x1] }
 0x1de   : > { %v1216_v11 = vld [vmem:[#allocation6 + $0x1b0] sm:$0xff]  ;;  %v3052_v13 = vld [vmem:[#allocation4] ss:$0 sm:$0xff]  ;;  %v1281_v8 = vmul.f32 %v1280_v12, %v1279_v60  ;;  %v1220_v21 = vld [vmem:[#allocation6 + $0x168] sm:$0xff] }
 0x1df   : > { %v1355_v48 = vshrl.u32 %v1354_v44, 7  ;;  %v1217_v54 = vld [vmem:[#allocation6 + $0xd8] sm:$0xff]  ;;  %v1219_v18 = vld [vmem:[#allocation6 + $0x50] sm:$0xff]  ;;  %v1289_v2 = vsub.f32 %v1215_v7, %v3052_v13  ;;  %v1290_v42 = vsub.f32 %v1216_v11, %v3052_v13  ;;  %v1222_v46 = vld [vmem:[#allocation6 + $0x48] sm:$0xff]  ;;  %v1294_v15 = vsub.f32 %v1220_v21, %v3052_v13 }
 0x1e0   : > { %v1218_v16 = vld [vmem:[#allocation6 + $0x18] sm:$0xff]  ;;  %v1291_v20 = vsub.f32 %v1217_v54, %v3052_v13  ;;  %v1221_v22 = vld [vmem:[#allocation6 + $0x130] sm:$0xff]  ;;  %v1293_v26 = vsub.f32 %v1219_v18, %v3052_v13  ;;  %v1223_v58 = vld [vmem:[#allocation6 + $0x180] sm:$0xff]  ;;  %v1296_v31 = vsub.f32 %v1222_v46, %v3052_v13 }
 0x1e1   : > { %v1356_v23 = vsub.s32 0, %v1355_v48  ;;  %v1292_v33 = vsub.f32 %v1218_v16, %v3052_v13  ;;  %v1224_v28 = vld [vmem:[#allocation6 + $0x110] sm:$0xff]  ;;  %v1225_v27 = vld [vmem:[#allocation6 + $0x118] sm:$0xff]  ;;  %v1295_v30 = vsub.f32 %v1221_v22, %v3052_v13  ;;  %v1297_v50 = vsub.f32 %v1223_v58, %v3052_v13  ;;  %v1227_v53 = vld [vmem:[#allocation6 + $0x120] sm:$0xff] }
 0x1e2   : > { %v1298_v4 = vsub.f32 %v1224_v28, %v3052_v13  ;;  %v1226_v35 = vld [vmem:[#allocation6 + $0x98] sm:$0xff]  ;;  %v1228_v1 = vld [vmem:[#allocation6 + $0x150] sm:$0xff]  ;;  %v1299_v40 = vsub.f32 %v1225_v27, %v3052_v13  ;;  %v1301_v63 = vsub.f32 %v1227_v53, %v3052_v13  ;;  %v1229_v57 = vld [vmem:[#allocation6 + $0x108] sm:$0xff] }
 0x1e3   : > { %v3064_v36 = vrot.slane %v1281_v8, %v1356_v23  ;;  %v1300_v37 = vsub.f32 %v1226_v35, %v3052_v13  ;;  %v1230_v38 = vld [vmem:[#allocation6 + $0x60] sm:$0xff]  ;;  %v3074_v17 = vld [vmem:[%s3288_s3] ss:$0 sm:$0xff]  ;;  %v1302_v14 = vsub.f32 %v1228_v1, %v3052_v13  ;;  %v1303_v43 = vsub.f32 %v1229_v57, %v3052_v13 }
 0x1e4   : > { %v3069_v41 = vld [vmem:[#allocation6 + $0xe0] sm:$0xff]  ;;  %v1304_v45 = vsub.f32 %v1230_v38, %v3052_v13  ;;  %v1233_v53 = vld [vmem:[#allocation6 + $0x138] sm:$0xff] }
 0x1e5   : > { %v1305_v49 = vsub.f32 %v3069_v41, %v3052_v13  ;;  %v1359_v24 = vmul.f32 %v3064_v36, %v1289_v2  ;;  %v1360_v51 = vmul.f32 %v3064_v36, %v1290_v42  ;;  %v1361_v32 = vmul.f32 %v3064_v36, %v1291_v20  ;;  %v1234_v1 = vld [vmem:[#allocation6 + $0x140] sm:$0xff] }
 0x1e6   : > { %v1362_v9 = vmul.f32 %v3064_v36, %v1292_v33  ;;  %v1363_v52 = vmul.f32 %v3064_v36, %v1293_v26  ;;  %v1364_v55 = vmul.f32 %v3064_v36, %v1294_v15  ;;  %v1365_v19 = vmul.f32 %v3064_v36, %v1295_v30  ;;  %v1232_v15 = vld [vmem:[#allocation6 + $0x188] sm:$0xff]  ;;  %v1235_v38 = vld [vmem:[#allocation6 + $0x80] sm:$0xff] }
 0x1e7   : > { %v1366_v10 = vmul.f32 %v3064_v36, %v1296_v31  ;;  %v1430_v56 = vadd.f32 %v3074_v17, %v1359_v24  ;;  %v1431_v59 = vadd.f32 %v3074_v17, %v1360_v51  ;;  %v1432_v34 = vadd.f32 %v3074_v17, %v1361_v32  ;;  %v1237_v32 = vld [vmem:[#allocation6 + $0x1b8] sm:$0xff] }
 0x1e8   : > { %v1433_v61 = vadd.f32 %v3074_v17, %v1362_v9  ;;  %v1434_v25 = vadd.f32 %v3074_v17, %v1363_v52  ;;  %v1435_v62 = vadd.f32 %v3074_v17, %v1364_v55  ;;  %v1436_v0 = vadd.f32 %v3074_v17, %v1365_v19 }
 0x1e9   : > { %v1437_v47 = vadd.f32 %v3074_v17, %v1366_v10  ;;  %v1494_v3 = vmax.f32 %v1430_v56, 0.0  ;;  %v1495_v29 = vmax.f32 %v1431_v59, 0.0  ;;  %v1496_v5 = vmax.f32 %v1432_v34, 0.0  ;;  %v1238_v10 = vld [vmem:[#allocation6 + $0x28] sm:$0xff] }
 0x1ea   : > { %v1497_v6 = vmax.f32 %v1433_v61, 0.0  ;;  %v1498_v39 = vmax.f32 %v1434_v25, 0.0  ;;  %v1499_v7 = vmax.f32 %v1435_v62, 0.0  ;;  %v1500_v11 = vmax.f32 %v1436_v0, 0.0  ;;  %v1239_v0 = vld [vmem:[#allocation6 + $0x1e8] sm:$0xff] }
 0x1eb   : > { %v1501_v60 = vmax.f32 %v1437_v47, 0.0  ;;  %v2212_v44 = vpack.c.bf16 %v1495_v29, %v1494_v3  ;;  %v1367_v8 = vmul.f32 %v3064_v36, %v1297_v50  ;;  %v1368_v48 = vmul.f32 %v3064_v36, %v1298_v4 }
 0x1ec   : > { %v2217_v12 = vpack.c.bf16 %v1497_v6, %v1496_v5  ;;  %v2222_v54 = vpack.c.bf16 %v1499_v7, %v1498_v39  ;;  %v1369_v18 = vmul.f32 %v3064_v36, %v1299_v40  ;;  %v1370_v2 = vmul.f32 %v3064_v36, %v1300_v37 }
 0x1ed   : > { %v2227_v16 = vpack.c.bf16 %v1501_v60, %v1500_v11  ;;  %2213 = vst [vmem:[#allocation12] sm:$0xff] %v2212_v44   ;;  %v1438_v42 = vadd.f32 %v3074_v17, %v1367_v8  ;;  %v1439_v20 = vadd.f32 %v3074_v17, %v1368_v48  ;;  %v1371_v21 = vmul.f32 %v3064_v36, %v1301_v63  ;;  %v1240_v60 = vld [vmem:[#allocation6 + $0xf8] sm:$0xff] }
 0x1ee   : > { %2369 = vst [vmem:[#allocation12 + $0x8] sm:$0xff] %v2217_v12   ;;  %v1372_v22 = vmul.f32 %v3064_v36, %v1302_v14  ;;  %2370 = vst [vmem:[#allocation12 + $0x10] sm:$0xff] %v2222_v54   ;;  %v1440_v46 = vadd.f32 %v3074_v17, %v1369_v18  ;;  %v1441_v23 = vadd.f32 %v3074_v17, %v1370_v2  ;;  %v1236_v14 = vld [vmem:[#allocation6 + $0x1a8] sm:$0xff]  ;;  %v1241_v54 = vld [vmem:[#allocation6 + $0x160] sm:$0xff] }
 0x1ef   : > { %2371 = vst [vmem:[#allocation12 + $0x18] sm:$0xff] %v2227_v16   ;;  %v1373_v33 = vmul.f32 %v3064_v36, %v1303_v43  ;;  %v1374_v26 = vmul.f32 %v3064_v36, %v1304_v45  ;;  %v1502_v58 = vmax.f32 %v1438_v42, 0.0  ;;  %v1503_v28 = vmax.f32 %v1439_v20, 0.0  ;;  %v1242_v20 = vld [vmem:[#allocation6 + $0x30] sm:$0xff] }
 0x1f0   : > { %v1442_v27 = vadd.f32 %v3074_v17, %v1371_v21  ;;  %v1443_v30 = vadd.f32 %v3074_v17, %v1372_v22  ;;  %v1504_v31 = vmax.f32 %v1440_v46, 0.0  ;;  %v1505_v50 = vmax.f32 %v1441_v23, 0.0 }
 0x1f1   : > { %v1444_v4 = vadd.f32 %v3074_v17, %v1373_v33  ;;  %v1445_v35 = vadd.f32 %v3074_v17, %v1374_v26  ;;  %v2232_v40 = vpack.c.bf16 %v1503_v28, %v1502_v58  ;;  %v1306_v57 = vsub.f32 %v1232_v15, %v3052_v13  ;;  %v1243_v33 = vld [vmem:[#allocation6 + $0x1e0] sm:$0xff] }
 0x1f2   : > { %v1506_v37 = vmax.f32 %v1442_v27, 0.0  ;;  %v1507_v63 = vmax.f32 %v1443_v30, 0.0  ;;  %v2237_v43 = vpack.c.bf16 %v1505_v50, %v1504_v31  ;;  %v1375_v51 = vmul.f32 %v3064_v36, %v1305_v49  ;;  %v1244_v26 = vld [vmem:[#allocation6] sm:$0xff]  ;;  %v1245_v30 = vld [vmem:[#allocation6 + $0xf0] sm:$0xff] }
 0x1f3   : > { %v1508_v45 = vmax.f32 %v1444_v4, 0.0  ;;  %v1509_v24 = vmax.f32 %v1445_v35, 0.0  ;;  %2372 = vst [vmem:[#allocation12 + $0x20] sm:$0xff] %v2232_v40   ;;  %v1376_v52 = vmul.f32 %v3064_v36, %v1306_v57  ;;  %v1307_v55 = vsub.f32 %v1233_v53, %v3052_v13 }
 0x1f4   : > { %v2242_v9 = vpack.c.bf16 %v1507_v63, %v1506_v37  ;;  %v1308_v19 = vsub.f32 %v1234_v1, %v3052_v13  ;;  %2373 = vst [vmem:[#allocation12 + $0x28] sm:$0xff] %v2237_v43   ;;  %v1446_v59 = vadd.f32 %v3074_v17, %v1375_v51  ;;  %v1309_v34 = vsub.f32 %v1235_v38, %v3052_v13  ;;  %v1246_v63 = vld [vmem:[#allocation6 + $0x8] sm:$0xff] }
 0x1f5   : > { %v2247_v56 = vpack.c.bf16 %v1509_v24, %v1508_v45  ;;  %v1310_v41 = vsub.f32 %v1236_v14, %v3052_v13  ;;  %v1447_v49 = vadd.f32 %v3074_v17, %v1376_v52  ;;  %v1377_v61 = vmul.f32 %v3064_v36, %v1307_v55  ;;  %v1247_v45 = vld [vmem:[#allocation6 + $0x148] sm:$0xff] }
 0x1f6   : > { %2374 = vst [vmem:[#allocation12 + $0x30] sm:$0xff] %v2242_v9   ;;  %v1378_v25 = vmul.f32 %v3064_v36, %v1308_v19  ;;  %v1311_v62 = vsub.f32 %v1237_v32, %v3052_v13  ;;  %v1510_v47 = vmax.f32 %v1446_v59, 0.0  ;;  %v1379_v3 = vmul.f32 %v3064_v36, %v1309_v34 }
 0x1f7   : > { %2375 = vst [vmem:[#allocation12 + $0x38] sm:$0xff] %v2247_v56   ;;  %v1380_v29 = vmul.f32 %v3064_v36, %v1310_v41  ;;  %v1312_v5 = vsub.f32 %v1238_v10, %v3052_v13  ;;  %v1511_v6 = vmax.f32 %v1447_v49, 0.0  ;;  %v1448_v39 = vadd.f32 %v3074_v17, %v1377_v61  ;;  %v1248_v56 = vld [vmem:[#allocation6 + $0x1d0] sm:$0xff]  ;;  %v1249_v61 = vld [vmem:[#allocation6 + $0x100] sm:$0xff] }
 0x1f8   : > { %v1449_v7 = vadd.f32 %v3074_v17, %v1378_v25  ;;  %v1381_v11 = vmul.f32 %v3064_v36, %v1311_v62  ;;  %v1450_v44 = vadd.f32 %v3074_v17, %v1379_v3  ;;  %v1313_v48 = vsub.f32 %v1239_v0, %v3052_v13  ;;  %v1250_v3 = vld [vmem:[#allocation6 + $0xc8] sm:$0xff] }
 0x1f9   : > { %v1451_v12 = vadd.f32 %v3074_v17, %v1380_v29  ;;  %v1382_v8 = vmul.f32 %v3064_v36, %v1312_v5  ;;  %v2252_v16 = vpack.c.bf16 %v1511_v6, %v1510_v47  ;;  %v1512_v18 = vmax.f32 %v1448_v39, 0.0 }
 0x1fa   : > { %v1513_v2 = vmax.f32 %v1449_v7, 0.0  ;;  %v1452_v42 = vadd.f32 %v3074_v17, %v1381_v11  ;;  %v1514_v21 = vmax.f32 %v1450_v44, 0.0  ;;  %v1314_v23 = vsub.f32 %v1240_v60, %v3052_v13  ;;  %v1251_v7 = vld [vmem:[#allocation6 + $0x40] sm:$0xff]  ;;  %v1252_v11 = vld [vmem:[#allocation6 + $0x1f8] sm:$0xff] }
 0x1fb   : > { %v1515_v22 = vmax.f32 %v1451_v12, 0.0  ;;  %v1453_v46 = vadd.f32 %v3074_v17, %v1382_v8  ;;  %2376 = vst [vmem:[#allocation12 + $0x40] sm:$0xff] %v2252_v16   ;;  %v1383_v28 = vmul.f32 %v3064_v36, %v1313_v48  ;;  %v1315_v27 = vsub.f32 %v1241_v54, %v3052_v13  ;;  %v1253_v48 = vld [vmem:[#allocation6 + $0x20] sm:$0xff] }
 0x1fc   : > { %v2257_v15 = vpack.c.bf16 %v1513_v2, %v1512_v18  ;;  %v1516_v58 = vmax.f32 %v1452_v42, 0.0  ;;  %v1384_v4 = vmul.f32 %v3064_v36, %v1314_v23  ;;  %v1316_v35 = vsub.f32 %v1242_v20, %v3052_v13 }
 0x1fd   : > { %v2262_v31 = vpack.c.bf16 %v1515_v22, %v1514_v21  ;;  %v1517_v50 = vmax.f32 %v1453_v46, 0.0  ;;  %v1454_v53 = vadd.f32 %v3074_v17, %v1383_v28  ;;  %v1385_v1 = vmul.f32 %v3064_v36, %v1315_v27  ;;  %v1254_v46 = vld [vmem:[#allocation6 + $0x128] sm:$0xff] }
 0x1fe   : > { %2377 = vst [vmem:[#allocation12 + $0x48] sm:$0xff] %v2257_v15   ;;  %v1317_v40 = vsub.f32 %v1243_v33, %v3052_v13  ;;  %v1318_v37 = vsub.f32 %v1244_v26, %v3052_v13  ;;  %v1455_v38 = vadd.f32 %v3074_v17, %v1384_v4  ;;  %v1386_v14 = vmul.f32 %v3064_v36, %v1316_v35 }
 0x1ff   : > { %2378 = vst [vmem:[#allocation12 + $0x50] sm:$0xff] %v2262_v31   ;;  %v2267_v57 = vpack.c.bf16 %v1517_v50, %v1516_v58  ;;  %v1319_v43 = vsub.f32 %v1245_v30, %v3052_v13  ;;  %v1518_v24 = vmax.f32 %v1454_v53, 0.0  ;;  %v1456_v51 = vadd.f32 %v3074_v17, %v1385_v1  ;;  %v1255_v58 = vld [vmem:[#allocation6 + $0x1a0] sm:$0xff]  ;;  %v1256_v1 = vld [vmem:[#allocation6 + $0x1f0] sm:$0xff] }
 0x200   : > { %v1387_v32 = vmul.f32 %v3064_v36, %v1317_v40  ;;  %v1388_v9 = vmul.f32 %v3064_v36, %v1318_v37  ;;  %v1519_v52 = vmax.f32 %v1455_v38, 0.0  ;;  %v1457_v55 = vadd.f32 %v3074_v17, %v1386_v14  ;;  %v1257_v38 = vld [vmem:[#allocation6 + $0xe8] sm:$0xff] }
 0x201   : > { %2379 = vst [vmem:[#allocation12 + $0x58] sm:$0xff] %v2267_v57   ;;  %v1320_v19 = vsub.f32 %v1246_v63, %v3052_v13  ;;  %v1389_v10 = vmul.f32 %v3064_v36, %v1319_v43  ;;  %v1520_v59 = vmax.f32 %v1456_v51, 0.0  ;;  %v1321_v49 = vsub.f32 %v1247_v45, %v3052_v13  ;;  %v1258_v51 = vld [vmem:[#allocation6 + $0x78] sm:$0xff] }
 0x202   : > { %v1458_v34 = vadd.f32 %v3074_v17, %v1387_v32  ;;  %v1459_v41 = vadd.f32 %v3074_v17, %v1388_v9  ;;  %v2272_v25 = vpack.c.bf16 %v1519_v52, %v1518_v24  ;;  %v1521_v62 = vmax.f32 %v1457_v55, 0.0 }
 0x203   : > { %v1390_v0 = vmul.f32 %v3064_v36, %v1320_v19  ;;  %v1460_v47 = vadd.f32 %v3074_v17, %v1389_v10  ;;  %v1322_v6 = vsub.f32 %v1248_v56, %v3052_v13  ;;  %v1391_v39 = vmul.f32 %v3064_v36, %v1321_v49  ;;  %v1259_v19 = vld [vmem:[#allocation6 + $0x70] sm:$0xff]  ;;  %v1261_v49 = vld [vmem:[#allocation6 + $0x1d8] sm:$0xff] }
 0x204   : > { %v1522_v29 = vmax.f32 %v1458_v34, 0.0  ;;  %v1523_v5 = vmax.f32 %v1459_v41, 0.0  ;;  %2380 = vst [vmem:[#allocation12 + $0x60] sm:$0xff] %v2272_v25   ;;  %v2277_v60 = vpack.c.bf16 %v1521_v62, %v1520_v59  ;;  %v1323_v8 = vsub.f32 %v1249_v61, %v3052_v13  ;;  %v1260_v10 = vld [vmem:[#allocation6 + $0x90] sm:$0xff] }
 0x205   : > { %v1461_v44 = vadd.f32 %v3074_v17, %v1390_v0  ;;  %v1524_v12 = vmax.f32 %v1460_v47, 0.0  ;;  %v1392_v16 = vmul.f32 %v3064_v36, %v1322_v6  ;;  %v1462_v18 = vadd.f32 %v3074_v17, %v1391_v39  ;;  %v1262_v6 = vld [vmem:[#allocation6 + $0xd0] sm:$0xff] }
 0x206   : > { %v2282_v54 = vpack.c.bf16 %v1523_v5, %v1522_v29  ;;  %v1324_v2 = vsub.f32 %v1250_v3, %v3052_v13  ;;  %2381 = vst [vmem:[#allocation12 + $0x68] sm:$0xff] %v2277_v60   ;;  %v1393_v20 = vmul.f32 %v3064_v36, %v1323_v8  ;;  %v1325_v21 = vsub.f32 %v1251_v7, %v3052_v13 }
 0x207   : > { %v1525_v42 = vmax.f32 %v1461_v44, 0.0  ;;  %v1326_v22 = vsub.f32 %v1252_v11, %v3052_v13  ;;  %v1463_v23 = vadd.f32 %v3074_v17, %v1392_v16  ;;  %v1526_v33 = vmax.f32 %v1462_v18, 0.0  ;;  %v1263_v44 = vld [vmem:[#allocation6 + $0xb8] sm:$0xff] }
 0x208   : > { %2382 = vst [vmem:[#allocation12 + $0x70] sm:$0xff] %v2282_v54   ;;  %v1394_v26 = vmul.f32 %v3064_v36, %v1324_v2  ;;  %v1327_v15 = vsub.f32 %v1253_v48, %v3052_v13  ;;  %v1464_v27 = vadd.f32 %v3074_v17, %v1393_v20  ;;  %v1395_v30 = vmul.f32 %v3064_v36, %v1325_v21  ;;  %v1264_v20 = vld [vmem:[#allocation6 + $0x88] sm:$0xff] }
 0x209   : > { %v2287_v28 = vpack.c.bf16 %v1525_v42, %v1524_v12  ;;  %v1396_v31 = vmul.f32 %v3064_v36, %v1326_v22  ;;  %v1527_v50 = vmax.f32 %v1463_v23, 0.0  ;;  %v1328_v35 = vsub.f32 %v1254_v46, %v3052_v13 }
 0x20a   : > { %v1465_v4 = vadd.f32 %v3074_v17, %v1394_v26  ;;  %v1397_v53 = vmul.f32 %v3064_v36, %v1327_v15  ;;  %v1528_v40 = vmax.f32 %v1464_v27, 0.0  ;;  %v1466_v37 = vadd.f32 %v3074_v17, %v1395_v30  ;;  %v1266_v27 = vld [vmem:[#allocation6 + $0x1c8] sm:$0xff] }
 0x20b   : > { %2383 = vst [vmem:[#allocation12 + $0x78] sm:$0xff] %v2287_v28   ;;  %v1467_v63 = vadd.f32 %v3074_v17, %v1396_v31  ;;  %v1329_v57 = vsub.f32 %v1255_v58, %v3052_v13  ;;  %v2292_v14 = vpack.c.bf16 %v1527_v50, %v1526_v33  ;;  %v1398_v45 = vmul.f32 %v3064_v36, %v1328_v35  ;;  %v1265_v33 = vld [vmem:[#allocation6 + $0xa8] sm:$0xff]  ;;  %v1267_v35 = vld [vmem:[#allocation6 + $0x170] sm:$0xff] }
 0x20c   : > { %v1529_v43 = vmax.f32 %v1465_v4, 0.0  ;;  %v1468_v24 = vadd.f32 %v3074_v17, %v1397_v53  ;;  %v1530_v32 = vmax.f32 %v1466_v37, 0.0  ;;  %v1330_v52 = vsub.f32 %v1256_v1, %v3052_v13  ;;  %v1268_v53 = vld [vmem:[#allocation6 + $0x178] sm:$0xff] }
 0x20d   : > { %v1531_v9 = vmax.f32 %v1467_v63, 0.0  ;;  %v1399_v55 = vmul.f32 %v3064_v36, %v1329_v57  ;;  %2384 = vst [vmem:[#allocation12 + $0x80] sm:$0xff] %v2292_v14   ;;  %v1469_v59 = vadd.f32 %v3074_v17, %v1398_v45  ;;  %v1331_v41 = vsub.f32 %v1257_v38, %v3052_v13  ;;  %v1269_v57 = vld [vmem:[#allocation6 + $0x68] sm:$0xff] }
 0x20e   : > { %v2297_v56 = vpack.c.bf16 %v1529_v43, %v1528_v40  ;;  %v1532_v34 = vmax.f32 %v1468_v24, 0.0  ;;  %v1400_v25 = vmul.f32 %v3064_v36, %v1330_v52  ;;  %v1332_v0 = vsub.f32 %v1258_v51, %v3052_v13  ;;  %v1270_v52 = vld [vmem:[#allocation6 + $0x190] sm:$0xff] }
 0x20f   : > { %v2302_v61 = vpack.c.bf16 %v1531_v9, %v1530_v32  ;;  %v1470_v62 = vadd.f32 %v3074_v17, %v1399_v55  ;;  %v1533_v47 = vmax.f32 %v1469_v59, 0.0  ;;  %v1401_v3 = vmul.f32 %v3064_v36, %v1331_v41  ;;  %v1271_v59 = vld [vmem:[#allocation6 + $0x198] sm:$0xff] }
 0x210   : > { %2385 = vst [vmem:[#allocation12 + $0x88] sm:$0xff] %v2297_v56   ;;  %v1333_v29 = vsub.f32 %v1259_v19, %v3052_v13  ;;  %v1334_v5 = vsub.f32 %v1260_v10, %v3052_v13  ;;  %v1471_v39 = vadd.f32 %v3074_v17, %v1400_v25  ;;  %v1402_v11 = vmul.f32 %v3064_v36, %v1332_v0 }
 0x211   : > { %2386 = vst [vmem:[#allocation12 + $0x90] sm:$0xff] %v2302_v61   ;;  %v1534_v7 = vmax.f32 %v1470_v62, 0.0  ;;  %v1335_v60 = vsub.f32 %v1261_v49, %v3052_v13  ;;  %v2307_v12 = vpack.c.bf16 %v1533_v47, %v1532_v34  ;;  %v1472_v8 = vadd.f32 %v3074_v17, %v1401_v3  ;;  %v1272_v3 = vld [vmem:[#allocation6 + $0x38] sm:$0xff] }
 0x212   : > { %v1403_v48 = vmul.f32 %v3064_v36, %v1333_v29  ;;  %v1404_v54 = vmul.f32 %v3064_v36, %v1334_v5  ;;  %v1535_v16 = vmax.f32 %v1471_v39, 0.0  ;;  %v1473_v18 = vadd.f32 %v3074_v17, %v1402_v11 }
 0x213   : > { %v1336_v2 = vsub.f32 %v1262_v6, %v3052_v13  ;;  %v1405_v42 = vmul.f32 %v3064_v36, %v1335_v60  ;;  %2387 = vst [vmem:[#allocation12 + $0x98] sm:$0xff] %v2307_v12   ;;  %v1536_v21 = vmax.f32 %v1472_v8, 0.0  ;;  %v1337_v23 = vsub.f32 %v1263_v44, %v3052_v13  ;;  %v1274_v8 = vld [vmem:[#allocation6 + $0x1c0] sm:$0xff] }
 0x214   : > { %v1474_v22 = vadd.f32 %v3074_v17, %v1403_v48  ;;  %v1475_v46 = vadd.f32 %v3074_v17, %v1404_v54  ;;  %v2312_v26 = vpack.c.bf16 %v1535_v16, %v1534_v7  ;;  %v1537_v15 = vmax.f32 %v1473_v18, 0.0  ;;  %v1273_v7 = vld [vmem:[#allocation6 + $0xc0] sm:$0xff] }
 0x215   : > { %v1406_v58 = vmul.f32 %v3064_v36, %v1336_v2  ;;  %v1476_v28 = vadd.f32 %v3074_v17, %v1405_v42  ;;  %v1338_v50 = vsub.f32 %v1264_v20, %v3052_v13  ;;  %v1407_v4 = vmul.f32 %v3064_v36, %v1337_v23  ;;  %v1275_v2 = vld [vmem:[#allocation6 + $0x158] sm:$0xff]  ;;  %v1276_v42 = vld [vmem:[#allocation6 + $0x10] sm:$0xff] }
 0x216   : > { %v1538_v30 = vmax.f32 %v1474_v22, 0.0  ;;  %v1539_v31 = vmax.f32 %v1475_v46, 0.0  ;;  %2388 = vst [vmem:[#allocation12 + $0xa0] sm:$0xff] %v2312_v26   ;;  %v2317_v1 = vpack.c.bf16 %v1537_v15, %v1536_v21  ;;  %v1339_v63 = vsub.f32 %v1265_v33, %v3052_v13  ;;  %v1277_v23 = vld [vmem:[#allocation6 + $0x58] sm:$0xff] }
 0x217   : > { %v1477_v40 = vadd.f32 %v3074_v17, %v1406_v58  ;;  %v1540_v37 = vmax.f32 %v1476_v28, 0.0  ;;  %v1408_v14 = vmul.f32 %v3064_v36, %v1338_v50  ;;  %v1478_v43 = vadd.f32 %v3074_v17, %v1407_v4  ;;  %v1278_v50 = vld [vmem:[#allocation6 + $0xa0] sm:$0xff] }
 0x218   : > { %v2322_v38 = vpack.c.bf16 %v1539_v31, %v1538_v30  ;;  %v1340_v45 = vsub.f32 %v1266_v27, %v3052_v13  ;;  %2389 = vst [vmem:[#allocation12 + $0xa8] sm:$0xff] %v2317_v1   ;;  %v1409_v51 = vmul.f32 %v3064_v36, %v1339_v63  ;;  %v1341_v32 = vsub.f32 %v1267_v35, %v3052_v13 }
 0x219   : > { %v1541_v24 = vmax.f32 %v1477_v40, 0.0  ;;  %v1342_v9 = vsub.f32 %v1268_v53, %v3052_v13  ;;  %v1479_v55 = vadd.f32 %v3074_v17, %v1408_v14  ;;  %v1542_v19 = vmax.f32 %v1478_v43, 0.0 }
 0x21a   : > { %2390 = vst [vmem:[#allocation12 + $0xb0] sm:$0xff] %v2322_v38   ;;  %v1410_v10 = vmul.f32 %v3064_v36, %v1340_v45  ;;  %v1343_v56 = vsub.f32 %v1269_v57, %v3052_v13  ;;  %v1480_v41 = vadd.f32 %v3074_v17, %v1409_v51  ;;  %v1411_v49 = vmul.f32 %v3064_v36, %v1341_v32 }
 0x21b   : > { %v2327_v34 = vpack.c.bf16 %v1541_v24, %v1540_v37  ;;  %v1412_v61 = vmul.f32 %v3064_v36, %v1342_v9  ;;  %v1543_v25 = vmax.f32 %v1479_v55, 0.0  ;;  %v1344_v0 = vsub.f32 %v1270_v52, %v3052_v13 }
 0x21c   : > { %v1481_v62 = vadd.f32 %v3074_v17, %v1410_v10  ;;  %v1413_v47 = vmul.f32 %v3064_v36, %v1343_v56  ;;  %v1544_v29 = vmax.f32 %v1480_v41, 0.0  ;;  %v1482_v5 = vadd.f32 %v3074_v17, %v1411_v49 }
 0x21d   : > { %2391 = vst [vmem:[#allocation12 + $0xb8] sm:$0xff] %v2327_v34   ;;  %v1483_v6 = vadd.f32 %v3074_v17, %v1412_v61  ;;  %v1345_v39 = vsub.f32 %v1271_v59, %v3052_v13  ;;  %v2332_v11 = vpack.c.bf16 %v1543_v25, %v1542_v19  ;;  %v1414_v44 = vmul.f32 %v3064_v36, %v1344_v0 }
 0x21e   : > { %v1545_v60 = vmax.f32 %v1481_v62, 0.0  ;;  %v1484_v12 = vadd.f32 %v3074_v17, %v1413_v47  ;;  %v1546_v48 = vmax.f32 %v1482_v5, 0.0  ;;  %v1346_v16 = vsub.f32 %v1272_v3, %v3052_v13 }
 0x21f   : > { %v1547_v54 = vmax.f32 %v1483_v6, 0.0  ;;  %v1415_v18 = vmul.f32 %v3064_v36, %v1345_v39  ;;  %2392 = vst [vmem:[#allocation12 + $0xc0] sm:$0xff] %v2332_v11   ;;  %v1485_v21 = vadd.f32 %v3074_v17, %v1414_v44  ;;  %v1347_v46 = vsub.f32 %v1273_v7, %v3052_v13 }
 0x220   : > { %v2337_v20 = vpack.c.bf16 %v1545_v60, %v1544_v29  ;;  %v1548_v22 = vmax.f32 %v1484_v12, 0.0  ;;  %v1416_v26 = vmul.f32 %v3064_v36, %v1346_v16  ;;  %v1348_v58 = vsub.f32 %v1274_v8, %v3052_v13 }
 0x221   : > { %v2342_v33 = vpack.c.bf16 %v1547_v54, %v1546_v48  ;;  %v1486_v15 = vadd.f32 %v3074_v17, %v1415_v18  ;;  %v1549_v28 = vmax.f32 %v1485_v21, 0.0  ;;  %v1417_v27 = vmul.f32 %v3064_v36, %v1347_v46 }
 0x222   : > { %2393 = vst [vmem:[#allocation12 + $0xc8] sm:$0xff] %v2337_v20   ;;  %v1349_v30 = vsub.f32 %v1275_v2, %v3052_v13  ;;  %v1350_v31 = vsub.f32 %v1276_v42, %v3052_v13  ;;  %v1487_v4 = vadd.f32 %v3074_v17, %v1416_v26  ;;  %v1418_v53 = vmul.f32 %v3064_v36, %v1348_v58 }
 0x223   : > { %2394 = vst [vmem:[#allocation12 + $0xd0] sm:$0xff] %v2342_v33   ;;  %v1550_v35 = vmax.f32 %v1486_v15, 0.0  ;;  %v1351_v1 = vsub.f32 %v1277_v23, %v3052_v13  ;;  %v2347_v40 = vpack.c.bf16 %v1549_v28, %v1548_v22  ;;  %v1488_v37 = vadd.f32 %v3074_v17, %v1417_v27 }
 0x224   : > { %v1419_v63 = vmul.f32 %v3064_v36, %v1349_v30  ;;  %v1420_v57 = vmul.f32 %v3064_v36, %v1350_v31  ;;  %v1551_v38 = vmax.f32 %v1487_v4, 0.0  ;;  %v1489_v14 = vadd.f32 %v3074_v17, %v1418_v53 }
 0x225   : > { %v1352_v43 = vsub.f32 %v1278_v50, %v3052_v13  ;;  %v1421_v45 = vmul.f32 %v3064_v36, %v1351_v1  ;;  %2395 = vst [vmem:[#allocation12 + $0xd8] sm:$0xff] %v2347_v40   ;;  %v1552_v24 = vmax.f32 %v1488_v37, 0.0 }
 0x226   : > { %v1490_v51 = vadd.f32 %v3074_v17, %v1419_v63  ;;  %v1491_v32 = vadd.f32 %v3074_v17, %v1420_v57  ;;  %v2352_v9 = vpack.c.bf16 %v1551_v38, %v1550_v35  ;;  %v1553_v52 = vmax.f32 %v1489_v14, 0.0 }
 0x227   : > { %v1422_v55 = vmul.f32 %v3064_v36, %v1352_v43  ;;  %v1492_v19 = vadd.f32 %v3074_v17, %v1421_v45 }
 0x228   : > { %v1554_v10 = vmax.f32 %v1490_v51, 0.0  ;;  %v1555_v56 = vmax.f32 %v1491_v32, 0.0  ;;  %2396 = vst [vmem:[#allocation12 + $0xe0] sm:$0xff] %v2352_v9   ;;  %v2357_v59 = vpack.c.bf16 %v1553_v52, %v1552_v24 }
 0x229   : > { %v1493_v13 = vadd.f32 %v3074_v17, %v1422_v55  ;;  %v1556_v34 = vmax.f32 %v1492_v19, 0.0 }
 0x22a   : > { %v2362_v41 = vpack.c.bf16 %v1555_v56, %v1554_v10  ;;  %2397 = vst [vmem:[#allocation12 + $0xe8] sm:$0xff] %v2357_v59  }
 0x22b   : > { %v1557_v49 = vmax.f32 %v1493_v13, 0.0 }
 0x22c   : > { %2398 = vst [vmem:[#allocation12 + $0xf0] sm:$0xff] %v2362_v41  }
 0x22d   : > { %v2367_v61 = vpack.c.bf16 %v1557_v49, %v1556_v34 }
 0x22f   : > { %2399 = vst [vmem:[#allocation12 + $0xf8] sm:$0xff] %v2367_v61  }
 0x230 PF: > { %p3261_p5 = scmp.eq.s32.totalorder %s2020_s18, 1  ;;  %s2759_s21 = smov [#allocation12]  }
 0x231   : > { %s1894_s22 = sshll.u32 %s2759_s21, 4  ;;  %s1895_s22 = int_to_ptr.vmem [resolvable:$true] %s1894_s22 }
 0x232   : > { %s2694_s23 = scalar_lea.vmem %s1895_s22, 4096  ;;  %s2700_s24 = scalar_lea.vmem %s1895_s22, 8192 }
 0x233   : > { %p2695_p10 = scmp.ne.s32.totalorder %s1895_s22, %s2694_s23  ;;  %p2701_p12 = scmp.lt.s32.totalorder %s1895_s22, %s1895_s22 }
 0x234   : > { %p2702_p13 = scmp.lt.s32.totalorder %s2700_s24, %s2694_s23 }
 0x235   : > { %p2696_p11 = pnand %p2695_p10, %p3261_p5 }
 0x236   : > { %p2703_p0 = por %p2702_p13, %p2701_p12 }
 0x237   : > { %p2697_p4 = pneg %p2696_p11 }
 0x239   : > { %p2704_p1 = pnand %p2703_p0, %p2697_p4 }
 0x23b   : > { %2707 = shalt.err (!%p2704_p1)
}
 0x23c   : > { %s2760_s25 = smov 64   ;;  %s2761_s18 = smov 4  }
 0x23d   : > { %2545 = dma.vmem_to_hbm [thread:$0]  (%p3261_p5), %s1895_s22, 4096, %s3289_s4, [#allocation9], %s2760_s25, %s2760_s25, %s2761_s18  }
 0x23e PF: > { %p2567_p2 = scmp.eq.s32.totalorder %s2021_s19, 1 }
 0x240   : > { %p2557_p7 = pnand %p2567_p2, %p2026_p6 }
 0x242   : > { %p2558_p8 = pneg %p2557_p7 }
 0x244   : > { %2739 = dma.done.wait (%p2558_p8), [#allocation9], 4096  }
 0x245   : > { %2741 = vsyncadd (%p2558_p8), [#allocation9], 4294963200  ;;  %s21_s17 = sadd.s32 1, %s2752_s17   ;;  %s3296_s15 = smov %s2748_s16 }
 0x246   : > { %p18_p9 = scmp.ge.s32.totalorder %s21_s17, 4   ;;  %s3297_s16 = smov %s3299_s20 }
 0x248   :  { %20 = sbr.rel (!%p18_p9) target bundleno = 6 (0x6), region = 110 }
 0x24d   :  { %1915 = vsyncpa [#allocation8], 1 }
 0x24e   :  { %1917 = vsyncpa [#allocation8 + $0x1], 1 }
 0x24f   :  { %1918 = vsyncpa [#allocation11], 1 }
 0x250   :  { %1919 = vsyncpa [#allocation9], 1 }
 0x251   :  { %1921 = vsyncpa [#allocation9 + $0x1], 1 }

</bundles_post_ra>
